<compile_context>
chip_gen: v5e
topology: v5e:2x2
jax: 0.10.0
libtpu: 0.0.40
codegen_flags: <defaults>
</compile_context>

<pallas_src>
import jax
import jax.numpy as jnp
from jax.experimental import pallas as pl
from jax.experimental.pallas import tpu as pltpu


def lstm_kernel(x_ref, wih_ref, whh_ref, b_ref, h_all_ref, xw_sc, h_sc, c_sc):
    """Whole-sequence LSTM recurrence in one kernel invocation.

    x_ref   : (T, Bp, E)  bf16   time-major inputs (batch padded to 8)
    wih_ref : (E, 4H)     bf16   input->gates weights (gate order i, f, g, o)
    whh_ref : (H, 4H)     bf16   hidden->gates weights
    b_ref   : (1, 4H)     f32    combined bias (b_ih + b_hh)
    h_all_ref:(T, Bp, H)  f32    hidden states for every time step (output)
    xw_sc   : (T, Bp, 4H) f32    scratch: precomputed x@Wih + b
    h_sc/c_sc:(Bp, H)     f32    recurrent state
    """
    T, Bp, E = x_ref.shape
    H = whh_ref.shape[0]
    G = 4 * H

    # Non-recurrent half of the gate pre-activations, batched over all T:
    # one (T*Bp, E) @ (E, 4H) MXU matmul with f32 accumulation.
    x2d = x_ref[...].reshape(T * Bp, E)
    xw_sc[...] = (
        jnp.dot(x2d, wih_ref[...], preferred_element_type=jnp.float32)
        + b_ref[...]
    ).reshape(T, Bp, G)

    h_sc[...] = jnp.zeros_like(h_sc)
    c_sc[...] = jnp.zeros_like(c_sc)

    def step(t, carry):
        # Only the h @ W_hh matmul is sequential.
        gates = xw_sc[t] + jnp.dot(
            h_sc[...].astype(whh_ref.dtype), whh_ref[...],
            preferred_element_type=jnp.float32)                 # (Bp, 4H) f32

        # Apply the nonlinearities on the full (Bp, 4H) vreg tile (EUP),
        # then take static per-gate slices.
        sig = jax.nn.sigmoid(gates)
        tnh = jnp.tanh(gates)
        i = sig[:, 0 * H:1 * H]
        f = sig[:, 1 * H:2 * H]
        g = tnh[:, 2 * H:3 * H]
        o = sig[:, 3 * H:4 * H]

        c = f * c_sc[...] + i * g
        h = o * jnp.tanh(c)
        c_sc[...] = c
        h_sc[...] = h
        h_all_ref[t] = h
        return carry

    # Short fixed trip count -> fully unrolled for LLO scheduling visibility.
    jax.lax.fori_loop(0, T, step, 0, unroll=True)


def fc_kernel(h_ref, wfc_ref, bfc_ref, y_ref):
    """Decoupled output projection: (tm, H) @ (H, tn) + bias."""
    h = h_ref[...].astype(wfc_ref.dtype)          # bf16 matmul input
    y_ref[...] = (
        jnp.dot(h, wfc_ref[...], preferred_element_type=jnp.float32)
        + bfc_ref[...]
    ).astype(y_ref.dtype)


def _pick_tile(dim, candidates):
    for t in candidates:
        if dim % t == 0:
            return t
    return dim


def decoder_rnn_forward(features, captions, params):
    """features: (B, E) f32; captions: (B, Tcap) int32.  Returns (B, Tcap, V) f32."""
    emb = params["embedding"]                      # (V, E) f32
    cap = captions[:, :-1]                         # (B, Tcap-1)
    cap_emb = jnp.take(emb, cap, axis=0)           # (B, Tcap-1, E)  glue: gather
    x = jnp.concatenate([features[:, None, :], cap_emb], axis=1)   # (B, T, E)

    B, T, E = x.shape
    H = params["whh"].shape[0]
    V = params["wfc"].shape[1]
    G = 4 * H

    # Time-major; pad batch to the 8-row sublane height; bf16 matmul inputs.
    Bp = ((B + 7) // 8) * 8
    x_t = jnp.transpose(x, (1, 0, 2))                              # (T, B, E)
    x_t = jnp.pad(x_t, ((0, 0), (0, Bp - B), (0, 0))).astype(jnp.bfloat16)

    # ---- kernel 1: sequential recurrence, single invocation ------------------
    h_all = pl.pallas_call(
        lstm_kernel,
        out_shape=jax.ShapeDtypeStruct((T, Bp, H), jnp.float32),
        grid=(1,),
        in_specs=[
            pl.BlockSpec((T, Bp, E), lambda i: (0, 0, 0)),
            pl.BlockSpec((E, G), lambda i: (0, 0)),
            pl.BlockSpec((H, G), lambda i: (0, 0)),
            pl.BlockSpec((1, G), lambda i: (0, 0)),
        ],
        out_specs=pl.BlockSpec((T, Bp, H), lambda i: (0, 0, 0)),
        scratch_shapes=[
            pltpu.VMEM((T, Bp, G), jnp.float32),   # x@Wih + b for all t
            pltpu.VMEM((Bp, H), jnp.float32),      # h
            pltpu.VMEM((Bp, H), jnp.float32),      # c
        ],
        compiler_params=pltpu.CompilerParams(
            dimension_semantics=("arbitrary",)),   # recurrent: sequential
    )(x_t, params["wih"], params["whh"], params["b"])

    # ---- kernel 2: output projection, fully parallel --------------------------
    # TODO(synk): at realistic H/V, also single-buffer the resident weight tiles
    # and cap vmem_limit_bytes for v7x's 64 MiB VMEM.
    M = T * Bp
    tm = _pick_tile(M, (256, 128, 64, 32, 16, 8))
    tn = _pick_tile(V, (512, 256, 128))
    y2d = pl.pallas_call(
        fc_kernel,
        out_shape=jax.ShapeDtypeStruct((M, V), jnp.float32),
        grid=(M // tm, V // tn),
        in_specs=[
            pl.BlockSpec((tm, H), lambda i, j: (i, 0)),
            pl.BlockSpec((H, tn), lambda i, j: (0, j)),
            pl.BlockSpec((1, tn), lambda i, j: (0, j)),
        ],
        out_specs=pl.BlockSpec((tm, tn), lambda i, j: (i, j)),
        compiler_params=pltpu.CompilerParams(
            dimension_semantics=("parallel", "parallel")),
    )(h_all.reshape(M, H), params["wfc"], params["bfc"])

    y = y2d.reshape(T, Bp, V)[:, :B]               # drop batch padding
    return jnp.transpose(y, (1, 0, 2))             # (B, T, V) batch-first


def init_params(key, embed_size, hidden_size, vocab_size):
    """Deterministic synthetic init mirroring the module's init shapes."""
    kE, kIH, kHH, kBI, kBH, kFC = jax.random.split(key, 6)
    s = 1.0 / jnp.sqrt(hidden_size)
    emb = jax.random.uniform(kE, (vocab_size, embed_size), jnp.float32, -0.1, 0.1)
    # torch stores (4H, E)/(4H, H); we keep the transposed layout for the kernel.
    wih = jax.random.uniform(kIH, (embed_size, 4 * hidden_size), jnp.float32, -s, s)
    whh = jax.random.uniform(kHH, (hidden_size, 4 * hidden_size), jnp.float32, -s, s)
    b_ih = jax.random.uniform(kBI, (4 * hidden_size,), jnp.float32, -s, s)
    b_hh = jax.random.uniform(kBH, (4 * hidden_size,), jnp.float32, -s, s)
    wfc = jax.random.uniform(kFC, (hidden_size, vocab_size), jnp.float32, -0.1, 0.1)
    bfc = jnp.zeros((vocab_size,), jnp.float32)
    return {
        "embedding": emb,
        "wih": wih.astype(jnp.bfloat16),           # bf16 MXU operands
        "whh": whh.astype(jnp.bfloat16),
        "b": (b_ih + b_hh)[None, :],               # (1, 4H) f32 combined bias
        "wfc": wfc.astype(jnp.bfloat16),
        "bfc": bfc[None, :],                       # (1, V)  f32
    }


def reference_forward(features, captions, params):
    """Pure-JAX reference (same math, same bf16 casts) for correctness check."""
    emb = params["embedding"]
    cap = captions[:, :-1]
    x = jnp.concatenate([features[:, None, :], jnp.take(emb, cap, axis=0)], axis=1)
    B, T, E = x.shape
    H = params["whh"].shape[0]
    V = params["wfc"].shape[1]
    wih, whh, b = params["wih"], params["whh"], params["b"][0]
    x_bf = jnp.transpose(x, (1, 0, 2)).astype(jnp.bfloat16)        # (T, B, E)

    def step(carry, x_t):
        h, c = carry
        gates = (jnp.dot(x_t, wih, preferred_element_type=jnp.float32)
                 + jnp.dot(h.astype(jnp.bfloat16), whh,
                           preferred_element_type=jnp.float32)
                 + b)
        i = jax.nn.sigmoid(gates[:, 0 * H:1 * H])
        f = jax.nn.sigmoid(gates[:, 1 * H:2 * H])
        g = jnp.tanh(gates[:, 2 * H:3 * H])
        o = jax.nn.sigmoid(gates[:, 3 * H:4 * H])
        c = f * c + i * g
        h = o * jnp.tanh(c)
        return (h, c), h

    h0 = jnp.zeros((B, H), jnp.float32)
    (_, _), hs = jax.lax.scan(step, (h0, h0), x_bf)                # (T, B, H)
    logits = (jnp.dot(hs.reshape(T * B, H).astype(jnp.bfloat16), params["wfc"],
                      preferred_element_type=jnp.float32)
              + params["bfc"][0]).reshape(T, B, V)
    return jnp.transpose(logits, (1, 0, 2))


if __name__ == "__main__":
    embed_size, hidden_size, vocab_size = 32, 32, 128
    batch, cap_len = 2, 8          # kernel sequence length = cap_len (1 feature + 7 tokens)

    key = jax.random.PRNGKey(0)
    kp, kf, kc = jax.random.split(key, 3)
    params = init_params(kp, embed_size, hidden_size, vocab_size)
    features = jax.random.normal(kf, (batch, embed_size), jnp.float32)
    captions = jax.random.randint(kc, (batch, cap_len), 0, vocab_size, jnp.int32)

    out = decoder_rnn_forward(features, captions, params)
    out = jax.block_until_ready(out)

    ref = reference_forward(features, captions, params)
    assert out.shape == (batch, cap_len, vocab_size)
    assert jnp.allclose(out, ref, atol=1e-2, rtol=1e-2), "mismatch vs JAX reference"

    print("KERNEL_OK")
</pallas_src>

<mosaic_0001>
module attributes {stable_mosaic.version = 11 : i64} {
  func.func @lstm_kernel(%arg0: i32, %arg1: memref<8x8x32xbf16, #tpu.memory_space<vmem>>, %arg2: memref<32x128xbf16, #tpu.memory_space<vmem>>, %arg3: memref<32x128xbf16, #tpu.memory_space<vmem>>, %arg4: memref<1x128xf32, #tpu.memory_space<vmem>>, %arg5: memref<8x8x32xf32, #tpu.memory_space<vmem>>, %arg6: memref<8x8x128xf32, #tpu.memory_space<vmem>>, %arg7: memref<8x32xf32, #tpu.memory_space<vmem>>, %arg8: memref<8x32xf32, #tpu.memory_space<vmem>>) attributes {dimension_semantics = [#tpu.dimension_semantics<arbitrary>], iteration_bounds = array<i64: 1>, scalar_prefetch = 0 : i64, scratch_operands = 3 : i64, tpu.core_type = #tpu.core_type<tc>, window_params = [{pipeline_mode = #tpu.pipeline_mode<synchronous>, transform_indices = @transform_0, window_bounds = array<i64: 8, 8, 32>}, {pipeline_mode = #tpu.pipeline_mode<synchronous>, transform_indices = @transform_1, window_bounds = array<i64: 32, 128>}, {pipeline_mode = #tpu.pipeline_mode<synchronous>, transform_indices = @transform_2, window_bounds = array<i64: 32, 128>}, {pipeline_mode = #tpu.pipeline_mode<synchronous>, transform_indices = @transform_3, window_bounds = array<i64: 1, 128>}, {pipeline_mode = #tpu.pipeline_mode<synchronous>, transform_indices = @transform_4, window_bounds = array<i64: 8, 8, 32>}]} {
    %c0 = arith.constant 0 : index
    %c0_0 = arith.constant 0 : index
    %c0_1 = arith.constant 0 : index
    %0 = vector.load %arg1[%c0, %c0_0, %c0_1] : memref<8x8x32xbf16, #tpu.memory_space<vmem>>, vector<8x8x32xbf16>
    %1 = vector.shape_cast %0 : vector<8x8x32xbf16> to vector<64x32xbf16>
    %c0_2 = arith.constant 0 : index
    %c0_3 = arith.constant 0 : index
    %2 = vector.load %arg2[%c0_2, %c0_3] : memref<32x128xbf16, #tpu.memory_space<vmem>>, vector<32x128xbf16>
    %cst = arith.constant dense<0.000000e+00> : vector<64x128xf32>
    %3 = tpu.matmul %1, %2, %cst {dimension_numbers = #tpu.dot_dimension_numbers<[1], [0], [0], [1], [0, 0, 1, 1], [], []>} : vector<64x32xbf16>, vector<32x128xbf16>, vector<64x128xf32> -> vector<64x128xf32>
    %c0_4 = arith.constant 0 : index
    %c0_5 = arith.constant 0 : index
    %4 = vector.load %arg4[%c0_4, %c0_5] : memref<1x128xf32, #tpu.memory_space<vmem>>, vector<1x128xf32>
    %5 = vector.broadcast %4 : vector<1x128xf32> to vector<64x128xf32>
    %6 = arith.addf %3, %5 : vector<64x128xf32>
    %7 = vector.shape_cast %6 : vector<64x128xf32> to vector<8x8x128xf32>
    %c0_6 = arith.constant 0 : index
    %c0_7 = arith.constant 0 : index
    %c0_8 = arith.constant 0 : index
    %8 = vector.load %arg6[%c0_6, %c0_7, %c0_8] : memref<8x8x128xf32, #tpu.memory_space<vmem>>, vector<8x8x128xf32>
    tpu.vector_store %arg6[%c0_6, %c0_7, %c0_8], %7 {strides = array<i32>} : memref<8x8x128xf32, #tpu.memory_space<vmem>>, vector<8x8x128xf32>,
    %cst_9 = arith.constant 0.000000e+00 : f32
    %9 = vector.broadcast %cst_9 : f32 to vector<8x32xf32>
    %c0_10 = arith.constant 0 : index
    %c0_11 = arith.constant 0 : index
    %10 = vector.load %arg7[%c0_10, %c0_11] : memref<8x32xf32, #tpu.memory_space<vmem>>, vector<8x32xf32>
    tpu.vector_store %arg7[%c0_10, %c0_11], %9 {strides = array<i32>} : memref<8x32xf32, #tpu.memory_space<vmem>>, vector<8x32xf32>,
    %cst_12 = arith.constant 0.000000e+00 : f32
    %11 = vector.broadcast %cst_12 : f32 to vector<8x32xf32>
    %c0_13 = arith.constant 0 : index
    %c0_14 = arith.constant 0 : index
    %12 = vector.load %arg8[%c0_13, %c0_14] : memref<8x32xf32, #tpu.memory_space<vmem>>, vector<8x32xf32>
    tpu.vector_store %arg8[%c0_13, %c0_14], %11 {strides = array<i32>} : memref<8x32xf32, #tpu.memory_space<vmem>>, vector<8x32xf32>,
    %c0_i32 = arith.constant 0 : i32
    %13 = arith.index_cast %c0_i32 : i32 to index
    %c0_15 = arith.constant 0 : index
    %c0_16 = arith.constant 0 : index
    %14 = vector.load %arg6[%13, %c0_15, %c0_16] : memref<8x8x128xf32, #tpu.memory_space<vmem>>, vector<1x8x128xf32>
    %15 = vector.shape_cast %14 : vector<1x8x128xf32> to vector<8x128xf32>
    %c0_17 = arith.constant 0 : index
    %c0_18 = arith.constant 0 : index
    %16 = vector.load %arg7[%c0_17, %c0_18] : memref<8x32xf32, #tpu.memory_space<vmem>>, vector<8x32xf32>
    %17 = arith.truncf %16 : vector<8x32xf32> to vector<8x32xbf16>
    %c0_19 = arith.constant 0 : index
    %c0_20 = arith.constant 0 : index
    %18 = vector.load %arg3[%c0_19, %c0_20] : memref<32x128xbf16, #tpu.memory_space<vmem>>, vector<32x128xbf16>
    %cst_21 = arith.constant dense<0.000000e+00> : vector<8x128xf32>
    %19 = tpu.matmul %17, %18, %cst_21 {dimension_numbers = #tpu.dot_dimension_numbers<[1], [0], [0], [1], [0, 0, 1, 1], [], []>} : vector<8x32xbf16>, vector<32x128xbf16>, vector<8x128xf32> -> vector<8x128xf32>
    %20 = arith.addf %15, %19 : vector<8x128xf32>
    %21 = arith.negf %20 : vector<8x128xf32>
    %22 = math.exp %21 : vector<8x128xf32>
    %cst_22 = arith.constant 1.000000e+00 : f32
    %23 = vector.broadcast %cst_22 : f32 to vector<8x128xf32>
    %24 = arith.addf %23, %22 : vector<8x128xf32>
    %25 = arith.divf %23, %24 : vector<8x128xf32>
    %26 = math.tanh %20 : vector<8x128xf32>
    %27 = vector.extract_strided_slice %25 {offsets = [0, 0], sizes = [8, 32], strides = [1, 1]} : vector<8x128xf32> to vector<8x32xf32>
    %28 = vector.extract_strided_slice %25 {offsets = [0, 32], sizes = [8, 32], strides = [1, 1]} : vector<8x128xf32> to vector<8x32xf32>
    %29 = vector.extract_strided_slice %26 {offsets = [0, 64], sizes = [8, 32], strides = [1, 1]} : vector<8x128xf32> to vector<8x32xf32>
    %30 = vector.extract_strided_slice %25 {offsets = [0, 96], sizes = [8, 32], strides = [1, 1]} : vector<8x128xf32> to vector<8x32xf32>
    %c0_23 = arith.constant 0 : index
    %c0_24 = arith.constant 0 : index
    %31 = vector.load %arg8[%c0_23, %c0_24] : memref<8x32xf32, #tpu.memory_space<vmem>>, vector<8x32xf32>
    %32 = arith.mulf %28, %31 : vector<8x32xf32>
    %33 = arith.mulf %27, %29 : vector<8x32xf32>
    %34 = arith.addf %32, %33 : vector<8x32xf32>
    %35 = math.tanh %34 : vector<8x32xf32>
    %36 = arith.mulf %30, %35 : vector<8x32xf32>
    %c0_25 = arith.constant 0 : index
    %c0_26 = arith.constant 0 : index
    %37 = vector.load %arg8[%c0_25, %c0_26] : memref<8x32xf32, #tpu.memory_space<vmem>>, vector<8x32xf32>
    tpu.vector_store %arg8[%c0_25, %c0_26], %34 {strides = array<i32>} : memref<8x32xf32, #tpu.memory_space<vmem>>, vector<8x32xf32>,
    %c0_27 = arith.constant 0 : index
    %c0_28 = arith.constant 0 : index
    %38 = vector.load %arg7[%c0_27, %c0_28] : memref<8x32xf32, #tpu.memory_space<vmem>>, vector<8x32xf32>
    tpu.vector_store %arg7[%c0_27, %c0_28], %36 {strides = array<i32>} : memref<8x32xf32, #tpu.memory_space<vmem>>, vector<8x32xf32>,
    %39 = arith.index_cast %c0_i32 : i32 to index
    %c0_29 = arith.constant 0 : index
    %c0_30 = arith.constant 0 : index
    %40 = vector.load %arg5[%39, %c0_29, %c0_30] : memref<8x8x32xf32, #tpu.memory_space<vmem>>, vector<1x8x32xf32>
    %41 = vector.shape_cast %40 : vector<1x8x32xf32> to vector<8x32xf32>
    %42 = vector.shape_cast %36 : vector<8x32xf32> to vector<1x8x32xf32>
    tpu.vector_store %arg5[%39, %c0_29, %c0_30], %42 {strides = array<i32>} : memref<8x8x32xf32, #tpu.memory_space<vmem>>, vector<1x8x32xf32>,
    %c1_i32 = arith.constant 1 : i32
    %43 = arith.index_cast %c1_i32 : i32 to index
    %c0_31 = arith.constant 0 : index
    %c0_32 = arith.constant 0 : index
    %44 = vector.load %arg6[%43, %c0_31, %c0_32] : memref<8x8x128xf32, #tpu.memory_space<vmem>>, vector<1x8x128xf32>
    %45 = vector.shape_cast %44 : vector<1x8x128xf32> to vector<8x128xf32>
    %c0_33 = arith.constant 0 : index
    %c0_34 = arith.constant 0 : index
    %46 = vector.load %arg7[%c0_33, %c0_34] : memref<8x32xf32, #tpu.memory_space<vmem>>, vector<8x32xf32>
    %47 = arith.truncf %46 : vector<8x32xf32> to vector<8x32xbf16>
    %c0_35 = arith.constant 0 : index
    %c0_36 = arith.constant 0 : index
    %48 = vector.load %arg3[%c0_35, %c0_36] : memref<32x128xbf16, #tpu.memory_space<vmem>>, vector<32x128xbf16>
    %cst_37 = arith.constant dense<0.000000e+00> : vector<8x128xf32>
    %49 = tpu.matmul %47, %48, %cst_37 {dimension_numbers = #tpu.dot_dimension_numbers<[1], [0], [0], [1], [0, 0, 1, 1], [], []>} : vector<8x32xbf16>, vector<32x128xbf16>, vector<8x128xf32> -> vector<8x128xf32>
    %50 = arith.addf %45, %49 : vector<8x128xf32>
    %51 = arith.negf %50 : vector<8x128xf32>
    %52 = math.exp %51 : vector<8x128xf32>
    %cst_38 = arith.constant 1.000000e+00 : f32
    %53 = vector.broadcast %cst_38 : f32 to vector<8x128xf32>
    %54 = arith.addf %53, %52 : vector<8x128xf32>
    %55 = arith.divf %53, %54 : vector<8x128xf32>
    %56 = math.tanh %50 : vector<8x128xf32>
    %57 = vector.extract_strided_slice %55 {offsets = [0, 0], sizes = [8, 32], strides = [1, 1]} : vector<8x128xf32> to vector<8x32xf32>
    %58 = vector.extract_strided_slice %55 {offsets = [0, 32], sizes = [8, 32], strides = [1, 1]} : vector<8x128xf32> to vector<8x32xf32>
    %59 = vector.extract_strided_slice %56 {offsets = [0, 64], sizes = [8, 32], strides = [1, 1]} : vector<8x128xf32> to vector<8x32xf32>
    %60 = vector.extract_strided_slice %55 {offsets = [0, 96], sizes = [8, 32], strides = [1, 1]} : vector<8x128xf32> to vector<8x32xf32>
    %c0_39 = arith.constant 0 : index
    %c0_40 = arith.constant 0 : index
    %61 = vector.load %arg8[%c0_39, %c0_40] : memref<8x32xf32, #tpu.memory_space<vmem>>, vector<8x32xf32>
    %62 = arith.mulf %58, %61 : vector<8x32xf32>
    %63 = arith.mulf %57, %59 : vector<8x32xf32>
    %64 = arith.addf %62, %63 : vector<8x32xf32>
    %65 = math.tanh %64 : vector<8x32xf32>
    %66 = arith.mulf %60, %65 : vector<8x32xf32>
    %c0_41 = arith.constant 0 : index
    %c0_42 = arith.constant 0 : index
    %67 = vector.load %arg8[%c0_41, %c0_42] : memref<8x32xf32, #tpu.memory_space<vmem>>, vector<8x32xf32>
    tpu.vector_store %arg8[%c0_41, %c0_42], %64 {strides = array<i32>} : memref<8x32xf32, #tpu.memory_space<vmem>>, vector<8x32xf32>,
    %c0_43 = arith.constant 0 : index
    %c0_44 = arith.constant 0 : index
    %68 = vector.load %arg7[%c0_43, %c0_44] : memref<8x32xf32, #tpu.memory_space<vmem>>, vector<8x32xf32>
    tpu.vector_store %arg7[%c0_43, %c0_44], %66 {strides = array<i32>} : memref<8x32xf32, #tpu.memory_space<vmem>>, vector<8x32xf32>,
    %69 = arith.index_cast %c1_i32 : i32 to index
    %c0_45 = arith.constant 0 : index
    %c0_46 = arith.constant 0 : index
    %70 = vector.load %arg5[%69, %c0_45, %c0_46] : memref<8x8x32xf32, #tpu.memory_space<vmem>>, vector<1x8x32xf32>
    %71 = vector.shape_cast %70 : vector<1x8x32xf32> to vector<8x32xf32>
    %72 = vector.shape_cast %66 : vector<8x32xf32> to vector<1x8x32xf32>
    tpu.vector_store %arg5[%69, %c0_45, %c0_46], %72 {strides = array<i32>} : memref<8x8x32xf32, #tpu.memory_space<vmem>>, vector<1x8x32xf32>,
    %c2_i32 = arith.constant 2 : i32
    %73 = arith.index_cast %c2_i32 : i32 to index
    %c0_47 = arith.constant 0 : index
    %c0_48 = arith.constant 0 : index
    %74 = vector.load %arg6[%73, %c0_47, %c0_48] : memref<8x8x128xf32, #tpu.memory_space<vmem>>, vector<1x8x128xf32>
    %75 = vector.shape_cast %74 : vector<1x8x128xf32> to vector<8x128xf32>
    %c0_49 = arith.constant 0 : index
    %c0_50 = arith.constant 0 : index
    %76 = vector.load %arg7[%c0_49, %c0_50] : memref<8x32xf32, #tpu.memory_space<vmem>>, vector<8x32xf32>
    %77 = arith.truncf %76 : vector<8x32xf32> to vector<8x32xbf16>
    %c0_51 = arith.constant 0 : index
    %c0_52 = arith.constant 0 : index
    %78 = vector.load %arg3[%c0_51, %c0_52] : memref<32x128xbf16, #tpu.memory_space<vmem>>, vector<32x128xbf16>
    %cst_53 = arith.constant dense<0.000000e+00> : vector<8x128xf32>
    %79 = tpu.matmul %77, %78, %cst_53 {dimension_numbers = #tpu.dot_dimension_numbers<[1], [0], [0], [1], [0, 0, 1, 1], [], []>} : vector<8x32xbf16>, vector<32x128xbf16>, vector<8x128xf32> -> vector<8x128xf32>
    %80 = arith.addf %75, %79 : vector<8x128xf32>
    %81 = arith.negf %80 : vector<8x128xf32>
    %82 = math.exp %81 : vector<8x128xf32>
    %cst_54 = arith.constant 1.000000e+00 : f32
    %83 = vector.broadcast %cst_54 : f32 to vector<8x128xf32>
    %84 = arith.addf %83, %82 : vector<8x128xf32>
    %85 = arith.divf %83, %84 : vector<8x128xf32>
    %86 = math.tanh %80 : vector<8x128xf32>
    %87 = vector.extract_strided_slice %85 {offsets = [0, 0], sizes = [8, 32], strides = [1, 1]} : vector<8x128xf32> to vector<8x32xf32>
    %88 = vector.extract_strided_slice %85 {offsets = [0, 32], sizes = [8, 32], strides = [1, 1]} : vector<8x128xf32> to vector<8x32xf32>
    %89 = vector.extract_strided_slice %86 {offsets = [0, 64], sizes = [8, 32], strides = [1, 1]} : vector<8x128xf32> to vector<8x32xf32>
    %90 = vector.extract_strided_slice %85 {offsets = [0, 96], sizes = [8, 32], strides = [1, 1]} : vector<8x128xf32> to vector<8x32xf32>
    %c0_55 = arith.constant 0 : index
    %c0_56 = arith.constant 0 : index
    %91 = vector.load %arg8[%c0_55, %c0_56] : memref<8x32xf32, #tpu.memory_space<vmem>>, vector<8x32xf32>
    %92 = arith.mulf %88, %91 : vector<8x32xf32>
    %93 = arith.mulf %87, %89 : vector<8x32xf32>
    %94 = arith.addf %92, %93 : vector<8x32xf32>
    %95 = math.tanh %94 : vector<8x32xf32>
    %96 = arith.mulf %90, %95 : vector<8x32xf32>
    %c0_57 = arith.constant 0 : index
    %c0_58 = arith.constant 0 : index
    %97 = vector.load %arg8[%c0_57, %c0_58] : memref<8x32xf32, #tpu.memory_space<vmem>>, vector<8x32xf32>
    tpu.vector_store %arg8[%c0_57, %c0_58], %94 {strides = array<i32>} : memref<8x32xf32, #tpu.memory_space<vmem>>, vector<8x32xf32>,
    %c0_59 = arith.constant 0 : index
    %c0_60 = arith.constant 0 : index
    %98 = vector.load %arg7[%c0_59, %c0_60] : memref<8x32xf32, #tpu.memory_space<vmem>>, vector<8x32xf32>
    tpu.vector_store %arg7[%c0_59, %c0_60], %96 {strides = array<i32>} : memref<8x32xf32, #tpu.memory_space<vmem>>, vector<8x32xf32>,
    %99 = arith.index_cast %c2_i32 : i32 to index
    %c0_61 = arith.constant 0 : index
    %c0_62 = arith.constant 0 : index
    %100 = vector.load %arg5[%99, %c0_61, %c0_62] : memref<8x8x32xf32, #tpu.memory_space<vmem>>, vector<1x8x32xf32>
    %101 = vector.shape_cast %100 : vector<1x8x32xf32> to vector<8x32xf32>
    %102 = vector.shape_cast %96 : vector<8x32xf32> to vector<1x8x32xf32>
    tpu.vector_store %arg5[%99, %c0_61, %c0_62], %102 {strides = array<i32>} : memref<8x8x32xf32, #tpu.memory_space<vmem>>, vector<1x8x32xf32>,
    %c3_i32 = arith.constant 3 : i32
    %103 = arith.index_cast %c3_i32 : i32 to index
    %c0_63 = arith.constant 0 : index
    %c0_64 = arith.constant 0 : index
    %104 = vector.load %arg6[%103, %c0_63, %c0_64] : memref<8x8x128xf32, #tpu.memory_space<vmem>>, vector<1x8x128xf32>
    %105 = vector.shape_cast %104 : vector<1x8x128xf32> to vector<8x128xf32>
    %c0_65 = arith.constant 0 : index
    %c0_66 = arith.constant 0 : index
    %106 = vector.load %arg7[%c0_65, %c0_66] : memref<8x32xf32, #tpu.memory_space<vmem>>, vector<8x32xf32>
    %107 = arith.truncf %106 : vector<8x32xf32> to vector<8x32xbf16>
    %c0_67 = arith.constant 0 : index
    %c0_68 = arith.constant 0 : index
    %108 = vector.load %arg3[%c0_67, %c0_68] : memref<32x128xbf16, #tpu.memory_space<vmem>>, vector<32x128xbf16>
    %cst_69 = arith.constant dense<0.000000e+00> : vector<8x128xf32>
    %109 = tpu.matmul %107, %108, %cst_69 {dimension_numbers = #tpu.dot_dimension_numbers<[1], [0], [0], [1], [0, 0, 1, 1], [], []>} : vector<8x32xbf16>, vector<32x128xbf16>, vector<8x128xf32> -> vector<8x128xf32>
    %110 = arith.addf %105, %109 : vector<8x128xf32>
    %111 = arith.negf %110 : vector<8x128xf32>
    %112 = math.exp %111 : vector<8x128xf32>
    %cst_70 = arith.constant 1.000000e+00 : f32
    %113 = vector.broadcast %cst_70 : f32 to vector<8x128xf32>
    %114 = arith.addf %113, %112 : vector<8x128xf32>
    %115 = arith.divf %113, %114 : vector<8x128xf32>
    %116 = math.tanh %110 : vector<8x128xf32>
    %117 = vector.extract_strided_slice %115 {offsets = [0, 0], sizes = [8, 32], strides = [1, 1]} : vector<8x128xf32> to vector<8x32xf32>
    %118 = vector.extract_strided_slice %115 {offsets = [0, 32], sizes = [8, 32], strides = [1, 1]} : vector<8x128xf32> to vector<8x32xf32>
    %119 = vector.extract_strided_slice %116 {offsets = [0, 64], sizes = [8, 32], strides = [1, 1]} : vector<8x128xf32> to vector<8x32xf32>
    %120 = vector.extract_strided_slice %115 {offsets = [0, 96], sizes = [8, 32], strides = [1, 1]} : vector<8x128xf32> to vector<8x32xf32>
    %c0_71 = arith.constant 0 : index
    %c0_72 = arith.constant 0 : index
    %121 = vector.load %arg8[%c0_71, %c0_72] : memref<8x32xf32, #tpu.memory_space<vmem>>, vector<8x32xf32>
    %122 = arith.mulf %118, %121 : vector<8x32xf32>
    %123 = arith.mulf %117, %119 : vector<8x32xf32>
    %124 = arith.addf %122, %123 : vector<8x32xf32>
    %125 = math.tanh %124 : vector<8x32xf32>
    %126 = arith.mulf %120, %125 : vector<8x32xf32>
    %c0_73 = arith.constant 0 : index
    %c0_74 = arith.constant 0 : index
    %127 = vector.load %arg8[%c0_73, %c0_74] : memref<8x32xf32, #tpu.memory_space<vmem>>, vector<8x32xf32>
    tpu.vector_store %arg8[%c0_73, %c0_74], %124 {strides = array<i32>} : memref<8x32xf32, #tpu.memory_space<vmem>>, vector<8x32xf32>,
    %c0_75 = arith.constant 0 : index
    %c0_76 = arith.constant 0 : index
    %128 = vector.load %arg7[%c0_75, %c0_76] : memref<8x32xf32, #tpu.memory_space<vmem>>, vector<8x32xf32>
    tpu.vector_store %arg7[%c0_75, %c0_76], %126 {strides = array<i32>} : memref<8x32xf32, #tpu.memory_space<vmem>>, vector<8x32xf32>,
    %129 = arith.index_cast %c3_i32 : i32 to index
    %c0_77 = arith.constant 0 : index
    %c0_78 = arith.constant 0 : index
    %130 = vector.load %arg5[%129, %c0_77, %c0_78] : memref<8x8x32xf32, #tpu.memory_space<vmem>>, vector<1x8x32xf32>
    %131 = vector.shape_cast %130 : vector<1x8x32xf32> to vector<8x32xf32>
    %132 = vector.shape_cast %126 : vector<8x32xf32> to vector<1x8x32xf32>
    tpu.vector_store %arg5[%129, %c0_77, %c0_78], %132 {strides = array<i32>} : memref<8x8x32xf32, #tpu.memory_space<vmem>>, vector<1x8x32xf32>,
    %c4_i32 = arith.constant 4 : i32
    %133 = arith.index_cast %c4_i32 : i32 to index
    %c0_79 = arith.constant 0 : index
    %c0_80 = arith.constant 0 : index
    %134 = vector.load %arg6[%133, %c0_79, %c0_80] : memref<8x8x128xf32, #tpu.memory_space<vmem>>, vector<1x8x128xf32>
    %135 = vector.shape_cast %134 : vector<1x8x128xf32> to vector<8x128xf32>
    %c0_81 = arith.constant 0 : index
    %c0_82 = arith.constant 0 : index
    %136 = vector.load %arg7[%c0_81, %c0_82] : memref<8x32xf32, #tpu.memory_space<vmem>>, vector<8x32xf32>
    %137 = arith.truncf %136 : vector<8x32xf32> to vector<8x32xbf16>
    %c0_83 = arith.constant 0 : index
    %c0_84 = arith.constant 0 : index
    %138 = vector.load %arg3[%c0_83, %c0_84] : memref<32x128xbf16, #tpu.memory_space<vmem>>, vector<32x128xbf16>
    %cst_85 = arith.constant dense<0.000000e+00> : vector<8x128xf32>
    %139 = tpu.matmul %137, %138, %cst_85 {dimension_numbers = #tpu.dot_dimension_numbers<[1], [0], [0], [1], [0, 0, 1, 1], [], []>} : vector<8x32xbf16>, vector<32x128xbf16>, vector<8x128xf32> -> vector<8x128xf32>
    %140 = arith.addf %135, %139 : vector<8x128xf32>
    %141 = arith.negf %140 : vector<8x128xf32>
    %142 = math.exp %141 : vector<8x128xf32>
    %cst_86 = arith.constant 1.000000e+00 : f32
    %143 = vector.broadcast %cst_86 : f32 to vector<8x128xf32>
    %144 = arith.addf %143, %142 : vector<8x128xf32>
    %145 = arith.divf %143, %144 : vector<8x128xf32>
    %146 = math.tanh %140 : vector<8x128xf32>
    %147 = vector.extract_strided_slice %145 {offsets = [0, 0], sizes = [8, 32], strides = [1, 1]} : vector<8x128xf32> to vector<8x32xf32>
    %148 = vector.extract_strided_slice %145 {offsets = [0, 32], sizes = [8, 32], strides = [1, 1]} : vector<8x128xf32> to vector<8x32xf32>
    %149 = vector.extract_strided_slice %146 {offsets = [0, 64], sizes = [8, 32], strides = [1, 1]} : vector<8x128xf32> to vector<8x32xf32>
    %150 = vector.extract_strided_slice %145 {offsets = [0, 96], sizes = [8, 32], strides = [1, 1]} : vector<8x128xf32> to vector<8x32xf32>
    %c0_87 = arith.constant 0 : index
    %c0_88 = arith.constant 0 : index
    %151 = vector.load %arg8[%c0_87, %c0_88] : memref<8x32xf32, #tpu.memory_space<vmem>>, vector<8x32xf32>
    %152 = arith.mulf %148, %151 : vector<8x32xf32>
    %153 = arith.mulf %147, %149 : vector<8x32xf32>
    %154 = arith.addf %152, %153 : vector<8x32xf32>
    %155 = math.tanh %154 : vector<8x32xf32>
    %156 = arith.mulf %150, %155 : vector<8x32xf32>
    %c0_89 = arith.constant 0 : index
    %c0_90 = arith.constant 0 : index
    %157 = vector.load %arg8[%c0_89, %c0_90] : memref<8x32xf32, #tpu.memory_space<vmem>>, vector<8x32xf32>
    tpu.vector_store %arg8[%c0_89, %c0_90], %154 {strides = array<i32>} : memref<8x32xf32, #tpu.memory_space<vmem>>, vector<8x32xf32>,
    %c0_91 = arith.constant 0 : index
    %c0_92 = arith.constant 0 : index
    %158 = vector.load %arg7[%c0_91, %c0_92] : memref<8x32xf32, #tpu.memory_space<vmem>>, vector<8x32xf32>
    tpu.vector_store %arg7[%c0_91, %c0_92], %156 {strides = array<i32>} : memref<8x32xf32, #tpu.memory_space<vmem>>, vector<8x32xf32>,
    %159 = arith.index_cast %c4_i32 : i32 to index
    %c0_93 = arith.constant 0 : index
    %c0_94 = arith.constant 0 : index
    %160 = vector.load %arg5[%159, %c0_93, %c0_94] : memref<8x8x32xf32, #tpu.memory_space<vmem>>, vector<1x8x32xf32>
    %161 = vector.shape_cast %160 : vector<1x8x32xf32> to vector<8x32xf32>
    %162 = vector.shape_cast %156 : vector<8x32xf32> to vector<1x8x32xf32>
    tpu.vector_store %arg5[%159, %c0_93, %c0_94], %162 {strides = array<i32>} : memref<8x8x32xf32, #tpu.memory_space<vmem>>, vector<1x8x32xf32>,
    %c5_i32 = arith.constant 5 : i32
    %163 = arith.index_cast %c5_i32 : i32 to index
    %c0_95 = arith.constant 0 : index
    %c0_96 = arith.constant 0 : index
    %164 = vector.load %arg6[%163, %c0_95, %c0_96] : memref<8x8x128xf32, #tpu.memory_space<vmem>>, vector<1x8x128xf32>
    %165 = vector.shape_cast %164 : vector<1x8x128xf32> to vector<8x128xf32>
    %c0_97 = arith.constant 0 : index
    %c0_98 = arith.constant 0 : index
    %166 = vector.load %arg7[%c0_97, %c0_98] : memref<8x32xf32, #tpu.memory_space<vmem>>, vector<8x32xf32>
    %167 = arith.truncf %166 : vector<8x32xf32> to vector<8x32xbf16>
    %c0_99 = arith.constant 0 : index
    %c0_100 = arith.constant 0 : index
    %168 = vector.load %arg3[%c0_99, %c0_100] : memref<32x128xbf16, #tpu.memory_space<vmem>>, vector<32x128xbf16>
    %cst_101 = arith.constant dense<0.000000e+00> : vector<8x128xf32>
    %169 = tpu.matmul %167, %168, %cst_101 {dimension_numbers = #tpu.dot_dimension_numbers<[1], [0], [0], [1], [0, 0, 1, 1], [], []>} : vector<8x32xbf16>, vector<32x128xbf16>, vector<8x128xf32> -> vector<8x128xf32>
    %170 = arith.addf %165, %169 : vector<8x128xf32>
    %171 = arith.negf %170 : vector<8x128xf32>
    %172 = math.exp %171 : vector<8x128xf32>
    %cst_102 = arith.constant 1.000000e+00 : f32
    %173 = vector.broadcast %cst_102 : f32 to vector<8x128xf32>
    %174 = arith.addf %173, %172 : vector<8x128xf32>
    %175 = arith.divf %173, %174 : vector<8x128xf32>
    %176 = math.tanh %170 : vector<8x128xf32>
    %177 = vector.extract_strided_slice %175 {offsets = [0, 0], sizes = [8, 32], strides = [1, 1]} : vector<8x128xf32> to vector<8x32xf32>
    %178 = vector.extract_strided_slice %175 {offsets = [0, 32], sizes = [8, 32], strides = [1, 1]} : vector<8x128xf32> to vector<8x32xf32>
    %179 = vector.extract_strided_slice %176 {offsets = [0, 64], sizes = [8, 32], strides = [1, 1]} : vector<8x128xf32> to vector<8x32xf32>
    %180 = vector.extract_strided_slice %175 {offsets = [0, 96], sizes = [8, 32], strides = [1, 1]} : vector<8x128xf32> to vector<8x32xf32>
    %c0_103 = arith.constant 0 : index
    %c0_104 = arith.constant 0 : index
    %181 = vector.load %arg8[%c0_103, %c0_104] : memref<8x32xf32, #tpu.memory_space<vmem>>, vector<8x32xf32>
    %182 = arith.mulf %178, %181 : vector<8x32xf32>
    %183 = arith.mulf %177, %179 : vector<8x32xf32>
    %184 = arith.addf %182, %183 : vector<8x32xf32>
    %185 = math.tanh %184 : vector<8x32xf32>
    %186 = arith.mulf %180, %185 : vector<8x32xf32>
    %c0_105 = arith.constant 0 : index
    %c0_106 = arith.constant 0 : index
    %187 = vector.load %arg8[%c0_105, %c0_106] : memref<8x32xf32, #tpu.memory_space<vmem>>, vector<8x32xf32>
    tpu.vector_store %arg8[%c0_105, %c0_106], %184 {strides = array<i32>} : memref<8x32xf32, #tpu.memory_space<vmem>>, vector<8x32xf32>,
    %c0_107 = arith.constant 0 : index
    %c0_108 = arith.constant 0 : index
    %188 = vector.load %arg7[%c0_107, %c0_108] : memref<8x32xf32, #tpu.memory_space<vmem>>, vector<8x32xf32>
    tpu.vector_store %arg7[%c0_107, %c0_108], %186 {strides = array<i32>} : memref<8x32xf32, #tpu.memory_space<vmem>>, vector<8x32xf32>,
    %189 = arith.index_cast %c5_i32 : i32 to index
    %c0_109 = arith.constant 0 : index
    %c0_110 = arith.constant 0 : index
    %190 = vector.load %arg5[%189, %c0_109, %c0_110] : memref<8x8x32xf32, #tpu.memory_space<vmem>>, vector<1x8x32xf32>
    %191 = vector.shape_cast %190 : vector<1x8x32xf32> to vector<8x32xf32>
    %192 = vector.shape_cast %186 : vector<8x32xf32> to vector<1x8x32xf32>
    tpu.vector_store %arg5[%189, %c0_109, %c0_110], %192 {strides = array<i32>} : memref<8x8x32xf32, #tpu.memory_space<vmem>>, vector<1x8x32xf32>,
    %c6_i32 = arith.constant 6 : i32
    %193 = arith.index_cast %c6_i32 : i32 to index
    %c0_111 = arith.constant 0 : index
    %c0_112 = arith.constant 0 : index
    %194 = vector.load %arg6[%193, %c0_111, %c0_112] : memref<8x8x128xf32, #tpu.memory_space<vmem>>, vector<1x8x128xf32>
    %195 = vector.shape_cast %194 : vector<1x8x128xf32> to vector<8x128xf32>
    %c0_113 = arith.constant 0 : index
    %c0_114 = arith.constant 0 : index
    %196 = vector.load %arg7[%c0_113, %c0_114] : memref<8x32xf32, #tpu.memory_space<vmem>>, vector<8x32xf32>
    %197 = arith.truncf %196 : vector<8x32xf32> to vector<8x32xbf16>
    %c0_115 = arith.constant 0 : index
    %c0_116 = arith.constant 0 : index
    %198 = vector.load %arg3[%c0_115, %c0_116] : memref<32x128xbf16, #tpu.memory_space<vmem>>, vector<32x128xbf16>
    %cst_117 = arith.constant dense<0.000000e+00> : vector<8x128xf32>
    %199 = tpu.matmul %197, %198, %cst_117 {dimension_numbers = #tpu.dot_dimension_numbers<[1], [0], [0], [1], [0, 0, 1, 1], [], []>} : vector<8x32xbf16>, vector<32x128xbf16>, vector<8x128xf32> -> vector<8x128xf32>
    %200 = arith.addf %195, %199 : vector<8x128xf32>
    %201 = arith.negf %200 : vector<8x128xf32>
    %202 = math.exp %201 : vector<8x128xf32>
    %cst_118 = arith.constant 1.000000e+00 : f32
    %203 = vector.broadcast %cst_118 : f32 to vector<8x128xf32>
    %204 = arith.addf %203, %202 : vector<8x128xf32>
    %205 = arith.divf %203, %204 : vector<8x128xf32>
    %206 = math.tanh %200 : vector<8x128xf32>
    %207 = vector.extract_strided_slice %205 {offsets = [0, 0], sizes = [8, 32], strides = [1, 1]} : vector<8x128xf32> to vector<8x32xf32>
    %208 = vector.extract_strided_slice %205 {offsets = [0, 32], sizes = [8, 32], strides = [1, 1]} : vector<8x128xf32> to vector<8x32xf32>
    %209 = vector.extract_strided_slice %206 {offsets = [0, 64], sizes = [8, 32], strides = [1, 1]} : vector<8x128xf32> to vector<8x32xf32>
    %210 = vector.extract_strided_slice %205 {offsets = [0, 96], sizes = [8, 32], strides = [1, 1]} : vector<8x128xf32> to vector<8x32xf32>
    %c0_119 = arith.constant 0 : index
    %c0_120 = arith.constant 0 : index
    %211 = vector.load %arg8[%c0_119, %c0_120] : memref<8x32xf32, #tpu.memory_space<vmem>>, vector<8x32xf32>
    %212 = arith.mulf %208, %211 : vector<8x32xf32>
    %213 = arith.mulf %207, %209 : vector<8x32xf32>
    %214 = arith.addf %212, %213 : vector<8x32xf32>
    %215 = math.tanh %214 : vector<8x32xf32>
    %216 = arith.mulf %210, %215 : vector<8x32xf32>
    %c0_121 = arith.constant 0 : index
    %c0_122 = arith.constant 0 : index
    %217 = vector.load %arg8[%c0_121, %c0_122] : memref<8x32xf32, #tpu.memory_space<vmem>>, vector<8x32xf32>
    tpu.vector_store %arg8[%c0_121, %c0_122], %214 {strides = array<i32>} : memref<8x32xf32, #tpu.memory_space<vmem>>, vector<8x32xf32>,
    %c0_123 = arith.constant 0 : index
    %c0_124 = arith.constant 0 : index
    %218 = vector.load %arg7[%c0_123, %c0_124] : memref<8x32xf32, #tpu.memory_space<vmem>>, vector<8x32xf32>
    tpu.vector_store %arg7[%c0_123, %c0_124], %216 {strides = array<i32>} : memref<8x32xf32, #tpu.memory_space<vmem>>, vector<8x32xf32>,
    %219 = arith.index_cast %c6_i32 : i32 to index
    %c0_125 = arith.constant 0 : index
    %c0_126 = arith.constant 0 : index
    %220 = vector.load %arg5[%219, %c0_125, %c0_126] : memref<8x8x32xf32, #tpu.memory_space<vmem>>, vector<1x8x32xf32>
    %221 = vector.shape_cast %220 : vector<1x8x32xf32> to vector<8x32xf32>
    %222 = vector.shape_cast %216 : vector<8x32xf32> to vector<1x8x32xf32>
    tpu.vector_store %arg5[%219, %c0_125, %c0_126], %222 {strides = array<i32>} : memref<8x8x32xf32, #tpu.memory_space<vmem>>, vector<1x8x32xf32>,
    %c7_i32 = arith.constant 7 : i32
    %223 = arith.index_cast %c7_i32 : i32 to index
    %c0_127 = arith.constant 0 : index
    %c0_128 = arith.constant 0 : index
    %224 = vector.load %arg6[%223, %c0_127, %c0_128] : memref<8x8x128xf32, #tpu.memory_space<vmem>>, vector<1x8x128xf32>
    %225 = vector.shape_cast %224 : vector<1x8x128xf32> to vector<8x128xf32>
    %c0_129 = arith.constant 0 : index
    %c0_130 = arith.constant 0 : index
    %226 = vector.load %arg7[%c0_129, %c0_130] : memref<8x32xf32, #tpu.memory_space<vmem>>, vector<8x32xf32>
    %227 = arith.truncf %226 : vector<8x32xf32> to vector<8x32xbf16>
    %c0_131 = arith.constant 0 : index
    %c0_132 = arith.constant 0 : index
    %228 = vector.load %arg3[%c0_131, %c0_132] : memref<32x128xbf16, #tpu.memory_space<vmem>>, vector<32x128xbf16>
    %cst_133 = arith.constant dense<0.000000e+00> : vector<8x128xf32>
    %229 = tpu.matmul %227, %228, %cst_133 {dimension_numbers = #tpu.dot_dimension_numbers<[1], [0], [0], [1], [0, 0, 1, 1], [], []>} : vector<8x32xbf16>, vector<32x128xbf16>, vector<8x128xf32> -> vector<8x128xf32>
    %230 = arith.addf %225, %229 : vector<8x128xf32>
    %231 = arith.negf %230 : vector<8x128xf32>
    %232 = math.exp %231 : vector<8x128xf32>
    %cst_134 = arith.constant 1.000000e+00 : f32
    %233 = vector.broadcast %cst_134 : f32 to vector<8x128xf32>
    %234 = arith.addf %233, %232 : vector<8x128xf32>
    %235 = arith.divf %233, %234 : vector<8x128xf32>
    %236 = math.tanh %230 : vector<8x128xf32>
    %237 = vector.extract_strided_slice %235 {offsets = [0, 0], sizes = [8, 32], strides = [1, 1]} : vector<8x128xf32> to vector<8x32xf32>
    %238 = vector.extract_strided_slice %235 {offsets = [0, 32], sizes = [8, 32], strides = [1, 1]} : vector<8x128xf32> to vector<8x32xf32>
    %239 = vector.extract_strided_slice %236 {offsets = [0, 64], sizes = [8, 32], strides = [1, 1]} : vector<8x128xf32> to vector<8x32xf32>
    %240 = vector.extract_strided_slice %235 {offsets = [0, 96], sizes = [8, 32], strides = [1, 1]} : vector<8x128xf32> to vector<8x32xf32>
    %c0_135 = arith.constant 0 : index
    %c0_136 = arith.constant 0 : index
    %241 = vector.load %arg8[%c0_135, %c0_136] : memref<8x32xf32, #tpu.memory_space<vmem>>, vector<8x32xf32>
    %242 = arith.mulf %238, %241 : vector<8x32xf32>
    %243 = arith.mulf %237, %239 : vector<8x32xf32>
    %244 = arith.addf %242, %243 : vector<8x32xf32>
    %245 = math.tanh %244 : vector<8x32xf32>
    %246 = arith.mulf %240, %245 : vector<8x32xf32>
    %c0_137 = arith.constant 0 : index
    %c0_138 = arith.constant 0 : index
    %247 = vector.load %arg8[%c0_137, %c0_138] : memref<8x32xf32, #tpu.memory_space<vmem>>, vector<8x32xf32>
    tpu.vector_store %arg8[%c0_137, %c0_138], %244 {strides = array<i32>} : memref<8x32xf32, #tpu.memory_space<vmem>>, vector<8x32xf32>,
    %c0_139 = arith.constant 0 : index
    %c0_140 = arith.constant 0 : index
    %248 = vector.load %arg7[%c0_139, %c0_140] : memref<8x32xf32, #tpu.memory_space<vmem>>, vector<8x32xf32>
    tpu.vector_store %arg7[%c0_139, %c0_140], %246 {strides = array<i32>} : memref<8x32xf32, #tpu.memory_space<vmem>>, vector<8x32xf32>,
    %249 = arith.index_cast %c7_i32 : i32 to index
    %c0_141 = arith.constant 0 : index
    %c0_142 = arith.constant 0 : index
    %250 = vector.load %arg5[%249, %c0_141, %c0_142] : memref<8x8x32xf32, #tpu.memory_space<vmem>>, vector<1x8x32xf32>
    %251 = vector.shape_cast %250 : vector<1x8x32xf32> to vector<8x32xf32>
    %252 = vector.shape_cast %246 : vector<8x32xf32> to vector<1x8x32xf32>
    tpu.vector_store %arg5[%249, %c0_141, %c0_142], %252 {strides = array<i32>} : memref<8x8x32xf32, #tpu.memory_space<vmem>>, vector<1x8x32xf32>,
    %c8_i32 = arith.constant 8 : i32
    return
  }
  func.func @transform_0(%arg0: i32) -> (i32, i32, i32) {
    %c0_i32 = arith.constant 0 : i32
    %c0_i32_0 = arith.constant 0 : i32
    %c0_i32_1 = arith.constant 0 : i32
    %c0_i32_2 = arith.constant 0 : i32
    return %c0_i32, %c0_i32_0, %c0_i32_1 : i32, i32, i32
  }
  func.func @transform_1(%arg0: i32) -> (i32, i32) {
    %c0_i32 = arith.constant 0 : i32
    %c0_i32_0 = arith.constant 0 : i32
    %c0_i32_1 = arith.constant 0 : i32
    return %c0_i32, %c0_i32_0 : i32, i32
  }
  func.func @transform_2(%arg0: i32) -> (i32, i32) {
    %c0_i32 = arith.constant 0 : i32
    %c0_i32_0 = arith.constant 0 : i32
    %c0_i32_1 = arith.constant 0 : i32
    return %c0_i32, %c0_i32_0 : i32, i32
  }
  func.func @transform_3(%arg0: i32) -> (i32, i32) {
    %c0_i32 = arith.constant 0 : i32
    %c0_i32_0 = arith.constant 0 : i32
    %c0_i32_1 = arith.constant 0 : i32
    return %c0_i32, %c0_i32_0 : i32, i32
  }
  func.func @transform_4(%arg0: i32) -> (i32, i32, i32) {
    %c0_i32 = arith.constant 0 : i32
    %c0_i32_0 = arith.constant 0 : i32
    %c0_i32_1 = arith.constant 0 : i32
    %c0_i32_2 = arith.constant 0 : i32
    return %c0_i32, %c0_i32_0, %c0_i32_1 : i32, i32, i32
  }
}

</mosaic_0001>

<bundles_post_ra>
// kernel: tpu_custom_call.1
= control target key start
LH: loop header
LB: loop body
LE: loop exit
PB: predicated region body
PF: predicated region fallthrough
CT: control target
= control target key end

     0   :  { %9 = vsyncpa [#allocation6], 0  ;;  %s1381_s0 = inlined_call_operand.hbm [shape: bf16[8,8,32], index: 0, kind: input, shape index: {}]   ;;  %s1382_s1 = inlined_call_operand.hbm [shape: bf16[32,128], index: 1, kind: input, shape index: {}]   ;;  %s1383_s2 = inlined_call_operand.hbm [shape: bf16[32,128], index: 2, kind: input, shape index: {}]   ;;  %s1384_s3 = inlined_call_operand.vmem [shape: f32[1,128], index: 3, kind: input, shape index: {}]   ;;  %s1385_s4 = inlined_call_operand.hbm [shape: f32[8,8,32], index: 4, kind: output, shape index: {}]  }
   0x1   :  { %10 = vsyncpa [#allocation9], 0 }
   0x2   :  { %11 = vsyncpa [#allocation7], 0  ;;  %s29_s17 = sshll.u32 %s1382_s1, 4  ;;  %s1222_s18 = smov [#allocation8]   ;;  %s30_s17 = int_to_ptr.hbm [resolvable:$true] %s29_s17 }
   0x3   :  { %s31_s19 = sshll.u32 %s1222_s18, 4  ;;  %s16_s22 = sshll.u32 %s1381_s0, 4  ;;  %s32_s19 = int_to_ptr.vmem [resolvable:$true] %s31_s19  ;;  %s17_s22 = int_to_ptr.hbm [resolvable:$true] %s16_s22 }
   0x4   :  { %s1223_s23 = smov 64   ;;  %s1224_s24 = smov 4  }
   0x5   :  { %37 = dma.hbm_to_vmem [thread:$0]  %s30_s17, 256, %s32_s19, [#allocation9], %s1223_s23, %s1223_s23, %s1224_s24  }
   0x6   :  { %s1225_s25 = smov [#allocation5]   ;;  %s42_s1 = sshll.u32 %s1383_s2, 4  ;;  %s43_s1 = int_to_ptr.hbm [resolvable:$true] %s42_s1 }
   0x7   :  { %s18_s26 = sshll.u32 %s1225_s25, 4  ;;  %s1226_s29 = smov [#allocation10]   ;;  %s19_s26 = int_to_ptr.vmem [resolvable:$true] %s18_s26 }
   0x8   :  { %24 = dma.hbm_to_vmem [thread:$0]  %s17_s22, 512, %s19_s26, [#allocation6], %s1223_s23, %s1223_s23, %s1224_s24  }
   0x9   :  { %s44_s30 = sshll.u32 %s1226_s29, 4  ;;  %s45_s30 = int_to_ptr.vmem [resolvable:$true] %s44_s30 }
   0xa   :  { %50 = dma.hbm_to_vmem [thread:$0]  %s43_s1, 256, %s45_s30, [#allocation9], %s1223_s23, %s1223_s23, %s1224_s24  }
   0xb   :  { %1216 = dma.done.wait [#allocation6], 512  }
   0xc   :  { %1217 = vsyncadd [#allocation6], 4294966784 }
   0xd   :  { %1218 = dma.done.wait [#allocation9], 512  }
   0xe   :  { %1219 = vsyncadd [#allocation9], 4294966784  ;;  %vm114_vm0 = vcmask 261120   ;;  %v1227_v0 = vmov 0.0   ;;  %v1025_v1 = vld [vmem:[#allocation8 + $0x8] sm:$0xff]  ;;  %v1027_v2 = vld [vmem:[#allocation10 + $0x8] sm:$0xff] }
   0xf   :  { %164 = vst.msk [vmem:[#allocation3] sm:$0xff] %vm114_vm0, %v1227_v0  ;;  %v1024_v3 = vld [vmem:[#allocation8] sm:$0xff]  ;;  %133 = vmatpush.bf16.msra.mxu0 %v1025_v1  ;;  %194 = vmatpush.bf16.msra.mxu1 %v1027_v2  ;;  %v1026_v4 = vld [vmem:[#allocation10] sm:$0xff]  ;;  %s1228_s5 = smov 32   ;;  %v1029_v38 = vld [vmem:[#allocation10 + $0x8] sm:$0xff]  ;;  %s1230_s6 = smov [#allocation11]  }
  0x10   :  { %165 = vst.msk [vmem:[#allocation4] sm:$0xff] %vm114_vm0, %v1227_v0  ;;  %1042 = vmatpush.bf16.msra.mxu3 %v1025_v1  ;;  %v1020_v6 = vld [vmem:[#allocation5] sm:$0xff]  ;;  %v1280_v8 = vld [vmem:[%s1384_s3] ss:$0 sm:$0xff]  ;;  %s1229_s3 = smov 96   ;;  %284 = vmatpush.bf16.msra.mxu2 %v1029_v38  ;;  %s896_s7 = sshll.u32 %s1230_s6, 4  ;;  %s897_s7 = int_to_ptr.vmem [resolvable:$true] %s896_s7 }
  0x11   :  { %v1028_v39 = vld [vmem:[#allocation10] sm:$0xff]  ;;  %s898_s10 = sshll.u32 %s1385_s4, 4  ;;  %s1231_s11 = smov 128   ;;  %s899_s10 = int_to_ptr.hbm [resolvable:$true] %s898_s10 }
  0x12   :  { %s1232_s12 = smov 8  }
  0x13   :  { %134 = vmatpush.bf16.msra.mxu0 %v1024_v3  ;;  %195 = vmatpush.bf16.msra.mxu1 %v1026_v4 }
  0x14   :  { %1043 = vmatpush.bf16.msra.mxu3 %v1024_v3  ;;  %285 = vmatpush.bf16.msra.mxu2 %v1028_v39 }
  0x16   :  { %v167_v5 = vld [vmem:[#allocation3] sm:$0xff]  ;;  %936 = vmatmul.msk.bf16.vlgmr.msra.gmra.mxu0 %vm114_vm0, %v1020_v6 }
  0x17   :  { %v168_v7 = vpack.c.bf16 %v167_v5, %v167_v5  ;;  %v222_v15 = vld [vmem:[#allocation4] sm:$0xff] }
  0x19   :  { %948 = vmatmul.msk.bf16.vlgmr.msra.gmra.mxu1 %vm114_vm0, %v168_v7 }
  0x93   :  { %v136_v9 = vpop.f32.mrf.mxu0 }
  0x94   :  { %v137_v11 = vadd.f32 %v1280_v8, %v136_v9  ;;  %v1023_v9 = vld [vmem:[#allocation5 + $0x18] sm:$0xff] }
  0x95   :  { %939 = vmatmul.msk.bf16.vlgmr.msra.gmra.mxu3 %vm114_vm0, %v1023_v9 }
  0x96   :  { %v197_v10 = vpop.f32.mrf.mxu1 }
  0x97   :  { %v201_v12 = vadd.f32 %v197_v10, %v137_v11  ;;  %v1031_v10 = vld [vmem:[#allocation10 + $0x8] sm:$0xff] }
  0x98   :  { %375 = vmatpush.bf16.msrb.mxu3 %v1031_v10 }
  0x99   :  { %1056 = vtanh.f32 %v201_v12  ;;  %v949_v16 = vmul.f32 -1.442695, %v201_v12 }
  0x9b   :  { %1058 = vpow2.f32 %v949_v16  ;;  %v138_v45 = vpop.f32.mrf.mxu0 }
  0x9c   :  { %v139_v46 = vadd.f32 %v1280_v8, %v138_v45 }
  0x9e   :  { %v199_v13 = vpop.f32.mrf.mxu1 }
  0x9f   :  { %v1057_v14 = vpop.eup %1056 }
  0xa0   :  { %229 = vrot.lane.b32.xlu0 %v1057_v14, %s1223_s23  ;;  %v1030_v14 = vld [vmem:[#allocation10] sm:$0xff] }
  0xa1   :  { %v1059_v17 = vpop.eup %1058  ;;  %376 = vmatpush.bf16.msrb.mxu3 %v1030_v14 }
  0xa2   :  { %v205_v18 = vadd.f32 1.0, %v1059_v17 }
  0xa4   :  { %1060 = vrcp.f32 %v205_v18  ;;  %v217_v24 = vand.u32 2147483648, %v205_v18  ;;  %vm211_vm2 = vweird.f32 %v205_v18  ;;  %v215_v25 = vand.u32 2147483647, %v205_v18 }
  0xa6   :  { %v218_v27 = vor.u32 1.1754944e-38, %v217_v24  ;;  %vm216_vm4 = vcmp.eq.f32.partialorder %v215_v25, 8.507059e+37 }
  0xa8   :  { %224 = vrot.lane.b32.xlu0 %v222_v15, %s1228_s5  ;;  %v1021_v15 = vld [vmem:[#allocation5 + $0x8] sm:$0xff] }
  0xa9   :  { %937 = vmatmul.msk.bf16.gmra.mxu0 %vm114_vm0, %v1021_v15 }
  0xaa   :  { %v1061_v19 = vpop.eup %1060 }
  0xab   :  { %v207_v20 = vmul.f32 %v1061_v19, %v205_v18  ;;  %vm212_vm1 = vweird.f32 %v1061_v19 }
  0xac   :  { %vm213_vm3 = vmor %vm211_vm2, %vm212_vm1 }
  0xad   :  { %v208_v21 = vsub.f32 1.0, %v207_v20 }
  0xaf   :  { %v209_v22 = vmul.f32 %v1061_v19, %v208_v21 }
  0xb1   :  { %v210_v23 = vadd.f32 %v1061_v19, %v209_v22 }
  0xb3   :  { %v214_v26 = vsel %vm213_vm3, %v1061_v19, %v210_v23 }
  0xb4   :  { %v219_v29 = vsel %vm216_vm4, %v218_v27, %v214_v26 }
 0x112   :  { %v230_v28 = vpop.permute.xlu0 %229 }
 0x113   :  { %v232_v30 = vmul.f32 %v230_v28, %v219_v29 }
 0x115   :  { %234 = vrot.lane.b32.xlu1 %v232_v30, %s1228_s5 }
 0x118   :  { %v1307_v19 = vpop.f32.mrf.mxu3 }
 0x11a   :  { %v225_v31 = vpop.permute.xlu0 %224 }
 0x11b   :  { %v227_v32 = vmul.f32 %v225_v31, %v219_v29 }
 0x120   :  { %v1309_v20 = vpop.f32.mrf.mxu3 }
 0x126   :  { %v141_v21 = vpop.f32.mrf.mxu0 }
 0x127   :  { %v142_v22 = vadd.f32 %v1280_v8, %v141_v21 }
 0x187   :  { %v235_v33 = vpop.permute.xlu1 %234 }
 0x188   :  { %v237_v34 = vadd.f32 %v235_v33, %v227_v32 }
 0x18a   :  { %1062 = vtanh.f32 %v237_v34 }
 0x190   :  { %v1063_v35 = vpop.eup %1062 }
 0x191   :  { %240 = vrot.lane.b32.xlu1 %v1063_v35, %s1223_s23 }
 0x203   :  { %v241_v36 = vpop.permute.xlu1 %240 }
 0x204   :  { %v243_v37 = vmul.f32 %v241_v36, %v219_v29 }
 0x206   :  { %250 = vrot.lane.b32.xlu2 %v243_v37, %s1228_s5 }
 0x20e   :  { %245 = vrot.lane.b32.xlu2 %v237_v34, %s1229_s3 }
 0x260   :  { %v251_v40 = vpop.permute.xlu2 %250 }
 0x261   :  { %253 = vst.msk [vmem:[#allocation3] sm:$0xff] %vm114_vm0, %v251_v40 }
 0x262   :  { %254 = vst.msk [vmem:[#allocation11] sm:$0xff] %vm114_vm0, %v251_v40 }
 0x268   :  { %v246_v41 = vpop.permute.xlu2 %245  ;;  %v257_v42 = vld [vmem:[#allocation3] sm:$0xff] }
 0x269   :  { %248 = vst.msk [vmem:[#allocation4] sm:$0xff] %vm114_vm0, %v246_v41  ;;  %v258_v43 = vpack.c.bf16 %v257_v42, %v257_v42 }
 0x26b   :  { %958 = vmatmul.msk.bf16.vlgmr.msra.gmra.mxu2 %vm114_vm0, %v258_v43 }
 0x270   :  { %v312_v44 = vld [vmem:[#allocation4] sm:$0xff] }
 0x271   :  { %314 = vrot.lane.b32.xlu1 %v312_v44, %s1228_s5 }
 0x2e3   :  { %v315_v2 = vpop.permute.xlu1 %314 }
 0x2ee   :  { %v287_v47 = vpop.f32.mrf.mxu2 }
 0x2ef   :  { %v291_v48 = vadd.f32 %v287_v47, %v139_v46 }
 0x2f1   :  { %1064 = vtanh.f32 %v291_v48  ;;  %v959_v51 = vmul.f32 -1.442695, %v291_v48  ;;  %v1033_v48 = vld [vmem:[#allocation10 + $0x8] sm:$0xff] }
 0x2f2   :  { %466 = vmatpush.bf16.msrb.mxu1 %v1033_v48 }
 0x2f3   :  { %1066 = vpow2.f32 %v959_v51 }
 0x2f6   :  { %v289_v49 = vpop.f32.mrf.mxu2 }
 0x2f7   :  { %v1065_v50 = vpop.eup %1064 }
 0x2f8   :  { %319 = vrot.lane.b32.xlu0 %v1065_v50, %s1223_s23 }
 0x2f9   :  { %v1067_v52 = vpop.eup %1066 }
 0x2fa   :  { %v295_v53 = vadd.f32 1.0, %v1067_v52  ;;  %v1032_v52 = vld [vmem:[#allocation10] sm:$0xff] }
 0x2fb   :  { %467 = vmatpush.bf16.msrb.mxu1 %v1032_v52 }
 0x2fc   :  { %1068 = vrcp.f32 %v295_v53  ;;  %v307_v59 = vand.u32 2147483648, %v295_v53  ;;  %vm301_vm6 = vweird.f32 %v295_v53  ;;  %v305_v60 = vand.u32 2147483647, %v295_v53 }
 0x2fe   :  { %v308_v62 = vor.u32 1.1754944e-38, %v307_v59  ;;  %vm306_vm8 = vcmp.eq.f32.partialorder %v305_v60, 8.507059e+37 }
 0x302   :  { %v1069_v54 = vpop.eup %1068 }
 0x303   :  { %v297_v55 = vmul.f32 %v1069_v54, %v295_v53  ;;  %vm302_vm5 = vweird.f32 %v1069_v54 }
 0x304   :  { %vm303_vm7 = vmor %vm301_vm6, %vm302_vm5 }
 0x305   :  { %v298_v56 = vsub.f32 1.0, %v297_v55 }
 0x307   :  { %v299_v57 = vmul.f32 %v1069_v54, %v298_v56  ;;  %v143_v56 = vpop.f32.mrf.mxu0 }
 0x309   :  { %v300_v58 = vadd.f32 %v1069_v54, %v299_v57  ;;  %v144_v57 = vadd.f32 %v1280_v8, %v143_v56 }
 0x30b   :  { %v304_v61 = vsel %vm303_vm7, %v1069_v54, %v300_v58 }
 0x30c   :  { %v309_v0 = vsel %vm306_vm8, %v308_v62, %v304_v61 }
 0x30d   :  { %v317_v3 = vmul.f32 %v315_v2, %v309_v0 }
 0x36a   :  { %v320_v63 = vpop.permute.xlu0 %319 }
 0x36b   :  { %v322_v1 = vmul.f32 %v320_v63, %v309_v0 }
 0x36d   :  { %324 = vrot.lane.b32.xlu2 %v322_v1, %s1228_s5 }
 0x3c7   :  { %v325_v4 = vpop.permute.xlu2 %324 }
 0x3c8   :  { %v327_v5 = vadd.f32 %v325_v4, %v317_v3 }
 0x3ca   :  { %1070 = vtanh.f32 %v327_v5  ;;  %335 = vrot.lane.b32.xlu2 %v327_v5, %s1229_s3 }
 0x3d0   :  { %v1071_v6 = vpop.eup %1070 }
 0x3d1   :  { %330 = vrot.lane.b32.xlu0 %v1071_v6, %s1223_s23 }
 0x424   :  { %v336_v7 = vpop.permute.xlu2 %335 }
 0x425   :  { %338 = vst.msk [vmem:[#allocation4] sm:$0xff] %vm114_vm0, %v336_v7 }
 0x42c   :  { %v403_v13 = vld [vmem:[#allocation4] sm:$0xff] }
 0x443   :  { %v331_v11 = vpop.permute.xlu0 %330 }
 0x444   :  { %v333_v12 = vmul.f32 %v331_v11, %v309_v0 }
 0x446   :  { %340 = vrot.lane.b32.xlu1 %v333_v12, %s1228_s5 }
 0x44e   :  { %405 = vrot.lane.b32.xlu1 %v403_v13, %s1228_s5 }
 0x4b8   :  { %v341_v16 = vpop.permute.xlu1 %340 }
 0x4b9   :  { %343 = vst.msk [vmem:[#allocation3] sm:$0xff] %vm114_vm0, %v341_v16 }
 0x4ba   :  { %345 = vst.msk [vmem:[#allocation11 + $0x8] sm:$0xff] %vm114_vm0, %v341_v16 }
 0x4c0   :  { %v348_v17 = vld [vmem:[#allocation3] sm:$0xff]  ;;  %v406_v42 = vpop.permute.xlu1 %405 }
 0x4c1   :  { %v349_v18 = vpack.c.bf16 %v348_v17, %v348_v17 }
 0x4c3   :  { %968 = vmatmul.msk.bf16.vlgmr.msrb.gmra.mxu3 %vm114_vm0, %v349_v18 }
 0x546   :  { %v378_v23 = vpop.f32.mrf.mxu3 }
 0x547   :  { %v382_v24 = vadd.f32 %v378_v23, %v142_v22  ;;  %v1035_v22 = vld [vmem:[#allocation10 + $0x8] sm:$0xff] }
 0x548   :  { %557 = vmatpush.bf16.msrb.mxu2 %v1035_v22 }
 0x549   :  { %1072 = vtanh.f32 %v382_v24  ;;  %v969_v27 = vmul.f32 -1.442695, %v382_v24 }
 0x54b   :  { %1074 = vpow2.f32 %v969_v27  ;;  %v1022_v27 = vld [vmem:[#allocation5 + $0x10] sm:$0xff] }
 0x54c   :  { %938 = vmatmul.msk.bf16.gmra.mxu0 %vm114_vm0, %v1022_v27 }
 0x54e   :  { %v380_v25 = vpop.f32.mrf.mxu3 }
 0x54f   :  { %v1073_v26 = vpop.eup %1072 }
 0x550   :  { %410 = vrot.lane.b32.xlu0 %v1073_v26, %s1223_s23  ;;  %v1034_v26 = vld [vmem:[#allocation10] sm:$0xff] }
 0x551   :  { %v1075_v28 = vpop.eup %1074  ;;  %558 = vmatpush.bf16.msrb.mxu2 %v1034_v26 }
 0x552   :  { %v386_v29 = vadd.f32 1.0, %v1075_v28 }
 0x554   :  { %1076 = vrcp.f32 %v386_v29  ;;  %v398_v35 = vand.u32 2147483648, %v386_v29  ;;  %vm392_vm10 = vweird.f32 %v386_v29  ;;  %v396_v36 = vand.u32 2147483647, %v386_v29 }
 0x556   :  { %v399_v38 = vor.u32 1.1754944e-38, %v398_v35  ;;  %vm397_vm12 = vcmp.eq.f32.partialorder %v396_v36, 8.507059e+37 }
 0x55a   :  { %v1077_v30 = vpop.eup %1076 }
 0x55b   :  { %v388_v31 = vmul.f32 %v1077_v30, %v386_v29  ;;  %vm393_vm9 = vweird.f32 %v1077_v30 }
 0x55c   :  { %vm394_vm11 = vmor %vm392_vm10, %vm393_vm9 }
 0x55d   :  { %v389_v32 = vsub.f32 1.0, %v388_v31 }
 0x55f   :  { %v390_v33 = vmul.f32 %v1077_v30, %v389_v32 }
 0x561   :  { %v391_v34 = vadd.f32 %v1077_v30, %v390_v33 }
 0x563   :  { %v395_v37 = vsel %vm394_vm11, %v1077_v30, %v391_v34 }
 0x564   :  { %v400_v40 = vsel %vm397_vm12, %v399_v38, %v395_v37 }
 0x565   :  { %v408_v43 = vmul.f32 %v406_v42, %v400_v40 }
 0x5c2   :  { %v411_v39 = vpop.permute.xlu0 %410 }
 0x5c3   :  { %v413_v41 = vmul.f32 %v411_v39, %v400_v40 }
 0x5c5   :  { %415 = vrot.lane.b32.xlu2 %v413_v41, %s1228_s5 }
 0x5c9   :  { %v146_v31 = vpop.f32.mrf.mxu0 }
 0x5ca   :  { %v147_v32 = vadd.f32 %v1280_v8, %v146_v31 }
 0x61f   :  { %v416_v44 = vpop.permute.xlu2 %415 }
 0x620   :  { %v418_v45 = vadd.f32 %v416_v44, %v408_v43 }
 0x622   :  { %1078 = vtanh.f32 %v418_v45  ;;  %426 = vrot.lane.b32.xlu2 %v418_v45, %s1229_s3 }
 0x628   :  { %v1079_v46 = vpop.eup %1078 }
 0x629   :  { %421 = vrot.lane.b32.xlu0 %v1079_v46, %s1223_s23 }
 0x67c   :  { %v427_v47 = vpop.permute.xlu2 %426 }
 0x67d   :  { %429 = vst.msk [vmem:[#allocation4] sm:$0xff] %vm114_vm0, %v427_v47 }
 0x684   :  { %v494_v51 = vld [vmem:[#allocation4] sm:$0xff] }
 0x69b   :  { %v422_v49 = vpop.permute.xlu0 %421 }
 0x69c   :  { %v424_v50 = vmul.f32 %v422_v49, %v400_v40 }
 0x69e   :  { %431 = vrot.lane.b32.xlu1 %v424_v50, %s1228_s5 }
 0x6a6   :  { %496 = vrot.lane.b32.xlu1 %v494_v51, %s1228_s5 }
 0x710   :  { %v432_v53 = vpop.permute.xlu1 %431 }
 0x711   :  { %434 = vst.msk [vmem:[#allocation3] sm:$0xff] %vm114_vm0, %v432_v53 }
 0x712   :  { %436 = vst.msk [vmem:[#allocation11 + $0x10] sm:$0xff] %vm114_vm0, %v432_v53 }
 0x718   :  { %v439_v54 = vld [vmem:[#allocation3] sm:$0xff]  ;;  %v497_v14 = vpop.permute.xlu1 %496 }
 0x719   :  { %v440_v55 = vpack.c.bf16 %v439_v54, %v439_v54 }
 0x71b   :  { %978 = vmatmul.msk.bf16.vlgmr.msrb.gmra.mxu1 %vm114_vm0, %v440_v55 }
 0x798   :  { %v469_v58 = vpop.f32.mrf.mxu1 }
 0x799   :  { %v473_v59 = vadd.f32 %v469_v58, %v144_v57  ;;  %v1037_v58 = vld [vmem:[#allocation10 + $0x8] sm:$0xff] }
 0x79a   :  { %648 = vmatpush.bf16.msra.mxu3 %v1037_v58 }
 0x79b   :  { %1080 = vtanh.f32 %v473_v59  ;;  %v979_v62 = vmul.f32 -1.442695, %v473_v59 }
 0x79d   :  { %1082 = vpow2.f32 %v979_v62  ;;  %v1036_v62 = vld [vmem:[#allocation10] sm:$0xff] }
 0x79e   :  { %649 = vmatpush.bf16.msra.mxu3 %v1036_v62 }
 0x7a0   :  { %v471_v60 = vpop.f32.mrf.mxu1 }
 0x7a1   :  { %v1081_v61 = vpop.eup %1080 }
 0x7a2   :  { %501 = vrot.lane.b32.xlu0 %v1081_v61, %s1223_s23 }
 0x7a3   :  { %v1083_v63 = vpop.eup %1082 }
 0x7a4   :  { %v477_v0 = vadd.f32 1.0, %v1083_v63 }
 0x7a6   :  { %1084 = vrcp.f32 %v477_v0  ;;  %v489_v6 = vand.u32 2147483648, %v477_v0  ;;  %vm483_vm14 = vweird.f32 %v477_v0  ;;  %v487_v7 = vand.u32 2147483647, %v477_v0 }
 0x7a8   :  { %v490_v10 = vor.u32 1.1754944e-38, %v489_v6  ;;  %vm488_vm1 = vcmp.eq.f32.partialorder %v487_v7, 8.507059e+37 }
 0x7ac   :  { %v1085_v1 = vpop.eup %1084 }
 0x7ad   :  { %v479_v2 = vmul.f32 %v1085_v1, %v477_v0  ;;  %vm484_vm13 = vweird.f32 %v1085_v1 }
 0x7ae   :  { %vm485_vm15 = vmor %vm483_vm14, %vm484_vm13 }
 0x7af   :  { %v480_v3 = vsub.f32 1.0, %v479_v2  ;;  %v148_v2 = vpop.f32.mrf.mxu0 }
 0x7b1   :  { %v481_v4 = vmul.f32 %v1085_v1, %v480_v3  ;;  %v149_v3 = vadd.f32 %v1280_v8, %v148_v2 }
 0x7b3   :  { %v482_v5 = vadd.f32 %v1085_v1, %v481_v4 }
 0x7b5   :  { %v486_v9 = vsel %vm485_vm15, %v1085_v1, %v482_v5 }
 0x7b6   :  { %v491_v12 = vsel %vm488_vm1, %v490_v10, %v486_v9 }
 0x7b7   :  { %v499_v15 = vmul.f32 %v497_v14, %v491_v12 }
 0x814   :  { %v502_v11 = vpop.permute.xlu0 %501 }
 0x815   :  { %v504_v13 = vmul.f32 %v502_v11, %v491_v12 }
 0x817   :  { %506 = vrot.lane.b32.xlu2 %v504_v13, %s1228_s5 }
 0x871   :  { %v507_v16 = vpop.permute.xlu2 %506 }
 0x872   :  { %v509_v17 = vadd.f32 %v507_v16, %v499_v15 }
 0x874   :  { %1086 = vtanh.f32 %v509_v17  ;;  %517 = vrot.lane.b32.xlu2 %v509_v17, %s1229_s3 }
 0x87a   :  { %v1087_v18 = vpop.eup %1086 }
 0x87b   :  { %512 = vrot.lane.b32.xlu0 %v1087_v18, %s1223_s23 }
 0x8ce   :  { %v518_v21 = vpop.permute.xlu2 %517 }
 0x8cf   :  { %520 = vst.msk [vmem:[#allocation4] sm:$0xff] %vm114_vm0, %v518_v21 }
 0x8d6   :  { %v585_v25 = vld [vmem:[#allocation4] sm:$0xff] }
 0x8ed   :  { %v513_v23 = vpop.permute.xlu0 %512 }
 0x8ee   :  { %v515_v24 = vmul.f32 %v513_v23, %v491_v12 }
 0x8f0   :  { %522 = vrot.lane.b32.xlu1 %v515_v24, %s1228_s5 }
 0x8f8   :  { %587 = vrot.lane.b32.xlu1 %v585_v25, %s1228_s5 }
 0x962   :  { %v523_v28 = vpop.permute.xlu1 %522 }
 0x963   :  { %525 = vst.msk [vmem:[#allocation3] sm:$0xff] %vm114_vm0, %v523_v28 }
 0x964   :  { %527 = vst.msk [vmem:[#allocation11 + $0x18] sm:$0xff] %vm114_vm0, %v523_v28 }
 0x96a   :  { %v530_v29 = vld [vmem:[#allocation3] sm:$0xff]  ;;  %v588_v52 = vpop.permute.xlu1 %587 }
 0x96b   :  { %v531_v30 = vpack.c.bf16 %v530_v29, %v530_v29 }
 0x96d   :  { %988 = vmatmul.msk.bf16.vlgmr.msrb.gmra.mxu2 %vm114_vm0, %v531_v30 }
 0x9f0   :  { %v560_v33 = vpop.f32.mrf.mxu2 }
 0x9f1   :  { %v564_v34 = vadd.f32 %v560_v33, %v147_v32  ;;  %v1039_v32 = vld [vmem:[#allocation10 + $0x8] sm:$0xff] }
 0x9f2   :  { %739 = vmatpush.bf16.msra.mxu1 %v1039_v32 }
 0x9f3   :  { %1088 = vtanh.f32 %v564_v34  ;;  %v989_v37 = vmul.f32 -1.442695, %v564_v34 }
 0x9f5   :  { %1090 = vpow2.f32 %v989_v37 }
 0x9f8   :  { %v562_v35 = vpop.f32.mrf.mxu2 }
 0x9f9   :  { %v1089_v36 = vpop.eup %1088 }
 0x9fa   :  { %592 = vrot.lane.b32.xlu0 %v1089_v36, %s1223_s23  ;;  %v1038_v36 = vld [vmem:[#allocation10] sm:$0xff] }
 0x9fb   :  { %v1091_v38 = vpop.eup %1090  ;;  %740 = vmatpush.bf16.msra.mxu1 %v1038_v36 }
 0x9fc   :  { %v568_v39 = vadd.f32 1.0, %v1091_v38 }
 0x9fe   :  { %1092 = vrcp.f32 %v568_v39  ;;  %v580_v45 = vand.u32 2147483648, %v568_v39  ;;  %vm574_vm3 = vweird.f32 %v568_v39  ;;  %v578_v46 = vand.u32 2147483647, %v568_v39 }
 0xa00   :  { %v581_v48 = vor.u32 1.1754944e-38, %v580_v45  ;;  %vm579_vm5 = vcmp.eq.f32.partialorder %v578_v46, 8.507059e+37 }
 0xa04   :  { %v1093_v40 = vpop.eup %1092 }
 0xa05   :  { %v570_v41 = vmul.f32 %v1093_v40, %v568_v39  ;;  %vm575_vm2 = vweird.f32 %v1093_v40 }
 0xa06   :  { %vm576_vm4 = vmor %vm574_vm3, %vm575_vm2 }
 0xa07   :  { %v571_v42 = vsub.f32 1.0, %v570_v41 }
 0xa09   :  { %v572_v43 = vmul.f32 %v1093_v40, %v571_v42 }
 0xa0b   :  { %v573_v44 = vadd.f32 %v1093_v40, %v572_v43 }
 0xa0d   :  { %v577_v47 = vsel %vm576_vm4, %v1093_v40, %v573_v44  ;;  %v152_v40 = vadd.f32 %v1280_v8, %v1307_v19 }
 0xa0e   :  { %v582_v50 = vsel %vm579_vm5, %v581_v48, %v577_v47 }
 0xa0f   :  { %v590_v53 = vmul.f32 %v588_v52, %v582_v50 }
 0xa6c   :  { %v593_v49 = vpop.permute.xlu0 %592 }
 0xa6d   :  { %v595_v51 = vmul.f32 %v593_v49, %v582_v50 }
 0xa6f   :  { %597 = vrot.lane.b32.xlu2 %v595_v51, %s1228_s5 }
 0xac9   :  { %v598_v54 = vpop.permute.xlu2 %597 }
 0xaca   :  { %v600_v55 = vadd.f32 %v598_v54, %v590_v53 }
 0xacc   :  { %1094 = vtanh.f32 %v600_v55  ;;  %608 = vrot.lane.b32.xlu2 %v600_v55, %s1229_s3 }
 0xad2   :  { %v1095_v56 = vpop.eup %1094 }
 0xad3   :  { %603 = vrot.lane.b32.xlu0 %v1095_v56, %s1223_s23 }
 0xb26   :  { %v609_v57 = vpop.permute.xlu2 %608 }
 0xb27   :  { %611 = vst.msk [vmem:[#allocation4] sm:$0xff] %vm114_vm0, %v609_v57 }
 0xb2e   :  { %v676_v61 = vld [vmem:[#allocation4] sm:$0xff] }
 0xb45   :  { %v604_v59 = vpop.permute.xlu0 %603 }
 0xb46   :  { %v606_v60 = vmul.f32 %v604_v59, %v582_v50 }
 0xb48   :  { %613 = vrot.lane.b32.xlu1 %v606_v60, %s1228_s5 }
 0xb50   :  { %678 = vrot.lane.b32.xlu1 %v676_v61, %s1228_s5 }
 0xbba   :  { %v614_v63 = vpop.permute.xlu1 %613 }
 0xbbb   :  { %616 = vst.msk [vmem:[#allocation3] sm:$0xff] %vm114_vm0, %v614_v63 }
 0xbbc   :  { %618 = vst.msk [vmem:[#allocation11 + $0x20] sm:$0xff] %vm114_vm0, %v614_v63 }
 0xbc2   :  { %v621_v0 = vld [vmem:[#allocation3] sm:$0xff]  ;;  %v679_v26 = vpop.permute.xlu1 %678 }
 0xbc3   :  { %v622_v1 = vpack.c.bf16 %v621_v0, %v621_v0 }
 0xbc5   :  { %998 = vmatmul.msk.bf16.vlgmr.msra.gmra.mxu3 %vm114_vm0, %v622_v1  ;;  %v1041_v1 = vld [vmem:[#allocation10 + $0x8] sm:$0xff] }
 0xbc6   :  { %830 = vmatpush.bf16.msra.mxu2 %v1041_v1 }
 0xc48   :  { %v651_v4 = vpop.f32.mrf.mxu3 }
 0xc49   :  { %v655_v5 = vadd.f32 %v651_v4, %v149_v3 }
 0xc4b   :  { %1096 = vtanh.f32 %v655_v5  ;;  %v999_v9 = vmul.f32 -1.442695, %v655_v5  ;;  %v1040_v5 = vld [vmem:[#allocation10] sm:$0xff] }
 0xc4c   :  { %831 = vmatpush.bf16.msra.mxu2 %v1040_v5 }
 0xc4d   :  { %1098 = vpow2.f32 %v999_v9 }
 0xc50   :  { %v653_v6 = vpop.f32.mrf.mxu3 }
 0xc51   :  { %v1097_v7 = vpop.eup %1096 }
 0xc52   :  { %683 = vrot.lane.b32.xlu0 %v1097_v7, %s1223_s23 }
 0xc53   :  { %v1099_v10 = vpop.eup %1098 }
 0xc54   :  { %v659_v11 = vadd.f32 1.0, %v1099_v10  ;;  %v154_v10 = vadd.f32 %v1280_v8, %v1309_v20 }
 0xc56   :  { %1100 = vrcp.f32 %v659_v11  ;;  %v671_v17 = vand.u32 2147483648, %v659_v11  ;;  %vm665_vm7 = vweird.f32 %v659_v11  ;;  %v669_v18 = vand.u32 2147483647, %v659_v11 }
 0xc58   :  { %v672_v22 = vor.u32 1.1754944e-38, %v671_v17  ;;  %vm670_vm9 = vcmp.eq.f32.partialorder %v669_v18, 8.507059e+37 }
 0xc5c   :  { %v1101_v12 = vpop.eup %1100 }
 0xc5d   :  { %v661_v13 = vmul.f32 %v1101_v12, %v659_v11  ;;  %vm666_vm6 = vweird.f32 %v1101_v12 }
 0xc5e   :  { %vm667_vm8 = vmor %vm665_vm7, %vm666_vm6 }
 0xc5f   :  { %v662_v14 = vsub.f32 1.0, %v661_v13 }
 0xc61   :  { %v663_v15 = vmul.f32 %v1101_v12, %v662_v14 }
 0xc63   :  { %v664_v16 = vadd.f32 %v1101_v12, %v663_v15 }
 0xc65   :  { %v668_v21 = vsel %vm667_vm8, %v1101_v12, %v664_v16 }
 0xc66   :  { %v673_v24 = vsel %vm670_vm9, %v672_v22, %v668_v21 }
 0xc67   :  { %v681_v27 = vmul.f32 %v679_v26, %v673_v24 }
 0xcc4   :  { %v684_v23 = vpop.permute.xlu0 %683 }
 0xcc5   :  { %v686_v25 = vmul.f32 %v684_v23, %v673_v24 }
 0xcc7   :  { %688 = vrot.lane.b32.xlu2 %v686_v25, %s1228_s5 }
 0xd21   :  { %v689_v28 = vpop.permute.xlu2 %688 }
 0xd22   :  { %v691_v29 = vadd.f32 %v689_v28, %v681_v27 }
 0xd24   :  { %1102 = vtanh.f32 %v691_v29  ;;  %699 = vrot.lane.b32.xlu2 %v691_v29, %s1229_s3 }
 0xd2a   :  { %v1103_v30 = vpop.eup %1102 }
 0xd2b   :  { %694 = vrot.lane.b32.xlu0 %v1103_v30, %s1223_s23 }
 0xd7e   :  { %v700_v31 = vpop.permute.xlu2 %699 }
 0xd7f   :  { %702 = vst.msk [vmem:[#allocation4] sm:$0xff] %vm114_vm0, %v700_v31 }
 0xd86   :  { %v767_v35 = vld [vmem:[#allocation4] sm:$0xff] }
 0xd9d   :  { %v695_v33 = vpop.permute.xlu0 %694 }
 0xd9e   :  { %v697_v34 = vmul.f32 %v695_v33, %v673_v24 }
 0xda0   :  { %704 = vrot.lane.b32.xlu1 %v697_v34, %s1228_s5 }
 0xda8   :  { %769 = vrot.lane.b32.xlu1 %v767_v35, %s1228_s5 }
 0xe12   :  { %v705_v37 = vpop.permute.xlu1 %704 }
 0xe13   :  { %707 = vst.msk [vmem:[#allocation3] sm:$0xff] %vm114_vm0, %v705_v37 }
 0xe14   :  { %709 = vst.msk [vmem:[#allocation11 + $0x28] sm:$0xff] %vm114_vm0, %v705_v37 }
 0xe1a   :  { %v712_v38 = vld [vmem:[#allocation3] sm:$0xff]  ;;  %v770_v59 = vpop.permute.xlu1 %769 }
 0xe1b   :  { %v713_v39 = vpack.c.bf16 %v712_v38, %v712_v38 }
 0xe1d   :  { %1008 = vmatmul.msk.bf16.vlgmr.msra.gmra.mxu1 %vm114_vm0, %v713_v39 }
 0xe9a   :  { %v742_v41 = vpop.f32.mrf.mxu1 }
 0xe9b   :  { %v746_v42 = vadd.f32 %v742_v41, %v152_v40 }
 0xe9d   :  { %1104 = vtanh.f32 %v746_v42  ;;  %v1009_v45 = vmul.f32 -1.442695, %v746_v42 }
 0xe9f   :  { %1106 = vpow2.f32 %v1009_v45 }
 0xea2   :  { %v744_v43 = vpop.f32.mrf.mxu1 }
 0xea3   :  { %v1105_v44 = vpop.eup %1104 }
 0xea4   :  { %774 = vrot.lane.b32.xlu0 %v1105_v44, %s1223_s23 }
 0xea5   :  { %v1107_v46 = vpop.eup %1106 }
 0xea6   :  { %v750_v47 = vadd.f32 1.0, %v1107_v46 }
 0xea8   :  { %1108 = vrcp.f32 %v750_v47  ;;  %v762_v53 = vand.u32 2147483648, %v750_v47  ;;  %vm756_vm11 = vweird.f32 %v750_v47  ;;  %v760_v19 = vand.u32 2147483647, %v750_v47 }
 0xeaa   :  { %v763_v55 = vor.u32 1.1754944e-38, %v762_v53  ;;  %vm761_vm13 = vcmp.eq.f32.partialorder %v760_v19, 8.507059e+37 }
 0xeae   :  { %v1109_v48 = vpop.eup %1108 }
 0xeaf   :  { %v752_v49 = vmul.f32 %v1109_v48, %v750_v47  ;;  %vm757_vm10 = vweird.f32 %v1109_v48 }
 0xeb0   :  { %vm758_vm12 = vmor %vm756_vm11, %vm757_vm10 }
 0xeb1   :  { %v753_v50 = vsub.f32 1.0, %v752_v49 }
 0xeb3   :  { %v754_v51 = vmul.f32 %v1109_v48, %v753_v50 }
 0xeb5   :  { %v755_v52 = vadd.f32 %v1109_v48, %v754_v51 }
 0xeb7   :  { %v759_v54 = vsel %vm758_vm12, %v1109_v48, %v755_v52 }
 0xeb8   :  { %v764_v57 = vsel %vm761_vm13, %v763_v55, %v759_v54 }
 0xeb9   :  { %v772_v60 = vmul.f32 %v770_v59, %v764_v57 }
 0xf16   :  { %v775_v56 = vpop.permute.xlu0 %774 }
 0xf17   :  { %v777_v58 = vmul.f32 %v775_v56, %v764_v57 }
 0xf19   :  { %779 = vrot.lane.b32.xlu2 %v777_v58, %s1228_s5 }
 0xf73   :  { %v780_v61 = vpop.permute.xlu2 %779 }
 0xf74   :  { %v782_v62 = vadd.f32 %v780_v61, %v772_v60 }
 0xf76   :  { %1110 = vtanh.f32 %v782_v62  ;;  %790 = vrot.lane.b32.xlu2 %v782_v62, %s1229_s3 }
 0xf7c   :  { %v1111_v63 = vpop.eup %1110 }
 0xf7d   :  { %785 = vrot.lane.b32.xlu0 %v1111_v63, %s1223_s23 }
 0xfd0   :  { %v791_v0 = vpop.permute.xlu2 %790 }
 0xfd1   :  { %793 = vst.msk [vmem:[#allocation4] sm:$0xff] %vm114_vm0, %v791_v0 }
 0xfd8   :  { %v858_v4 = vld [vmem:[#allocation4] sm:$0xff] }
 0xfef   :  { %v786_v2 = vpop.permute.xlu0 %785 }
 0xff0   :  { %v788_v3 = vmul.f32 %v786_v2, %v764_v57 }
 0xff2   :  { %795 = vrot.lane.b32.xlu1 %v788_v3, %s1228_s5 }
 0xffa   :  { %860 = vrot.lane.b32.xlu1 %v858_v4, %s1228_s5 }
0x1064   :  { %v796_v6 = vpop.permute.xlu1 %795 }
0x1065   :  { %798 = vst.msk [vmem:[#allocation3] sm:$0xff] %vm114_vm0, %v796_v6 }
0x1066   :  { %800 = vst.msk [vmem:[#allocation11 + $0x30] sm:$0xff] %vm114_vm0, %v796_v6 }
0x106c   :  { %v803_v7 = vld [vmem:[#allocation3] sm:$0xff]  ;;  %v861_v30 = vpop.permute.xlu1 %860 }
0x106d   :  { %v804_v9 = vpack.c.bf16 %v803_v7, %v803_v7 }
0x106f   :  { %1018 = vmatmul.msk.bf16.vlgmr.msra.gmra.mxu2 %vm114_vm0, %v804_v9 }
0x10f2   :  { %v833_v11 = vpop.f32.mrf.mxu2 }
0x10f3   :  { %v837_v12 = vadd.f32 %v833_v11, %v154_v10 }
0x10f5   :  { %1112 = vtanh.f32 %v837_v12  ;;  %v1019_v15 = vmul.f32 -1.442695, %v837_v12 }
0x10f7   :  { %1114 = vpow2.f32 %v1019_v15 }
0x10fa   :  { %v835_v13 = vpop.f32.mrf.mxu2 }
0x10fb   :  { %v1113_v14 = vpop.eup %1112 }
0x10fc   :  { %865 = vrot.lane.b32.xlu0 %v1113_v14, %s1223_s23 }
0x10fd   :  { %v1115_v16 = vpop.eup %1114 }
0x10fe   :  { %v841_v17 = vadd.f32 1.0, %v1115_v16 }
0x1100   :  { %1116 = vrcp.f32 %v841_v17  ;;  %v853_v25 = vand.u32 2147483648, %v841_v17  ;;  %vm847_vm15 = vweird.f32 %v841_v17  ;;  %v851_v8 = vand.u32 2147483647, %v841_v17 }
0x1102   :  { %v854_v26 = vor.u32 1.1754944e-38, %v853_v25  ;;  %vm852_vm2 = vcmp.eq.f32.partialorder %v851_v8, 8.507059e+37 }
0x1106   :  { %v1117_v18 = vpop.eup %1116 }
0x1107   :  { %v843_v21 = vmul.f32 %v1117_v18, %v841_v17  ;;  %vm848_vm14 = vweird.f32 %v1117_v18 }
0x1108   :  { %vm849_vm1 = vmor %vm847_vm15, %vm848_vm14 }
0x1109   :  { %v844_v22 = vsub.f32 1.0, %v843_v21 }
0x110b   :  { %v845_v23 = vmul.f32 %v1117_v18, %v844_v22 }
0x110d   :  { %v846_v24 = vadd.f32 %v1117_v18, %v845_v23 }
0x110f   :  { %v850_v20 = vsel %vm849_vm1, %v1117_v18, %v846_v24 }
0x1110   :  { %v855_v28 = vsel %vm852_vm2, %v854_v26, %v850_v20 }
0x1111   :  { %v863_v31 = vmul.f32 %v861_v30, %v855_v28 }
0x116e   :  { %v866_v27 = vpop.permute.xlu0 %865 }
0x116f   :  { %v868_v29 = vmul.f32 %v866_v27, %v855_v28 }
0x1171   :  { %870 = vrot.lane.b32.xlu2 %v868_v29, %s1228_s5 }
0x11cb   :  { %v871_v32 = vpop.permute.xlu2 %870 }
0x11cc   :  { %v873_v33 = vadd.f32 %v871_v32, %v863_v31 }
0x11ce   :  { %1118 = vtanh.f32 %v873_v33  ;;  %881 = vrot.lane.b32.xlu2 %v873_v33, %s1229_s3 }
0x11d4   :  { %v1119_v34 = vpop.eup %1118 }
0x11d5   :  { %876 = vrot.lane.b32.xlu0 %v1119_v34, %s1223_s23 }
0x1228   :  { %v882_v35 = vpop.permute.xlu2 %881 }
0x1229   :  { %884 = vst.msk [vmem:[#allocation4] sm:$0xff] %vm114_vm0, %v882_v35 }
0x1247   :  { %v877_v36 = vpop.permute.xlu0 %876 }
0x1248   :  { %v879_v37 = vmul.f32 %v877_v36, %v855_v28 }
0x124a   :  { %886 = vrot.lane.b32.xlu1 %v879_v37, %s1228_s5 }
0x12bc   :  { %v887_v38 = vpop.permute.xlu1 %886 }
0x12bd   :  { %889 = vst.msk [vmem:[#allocation3] sm:$0xff] %vm114_vm0, %v887_v38 }
0x12be   :  { %891 = vst.msk [vmem:[#allocation11 + $0x38] sm:$0xff] %vm114_vm0, %v887_v38 }
0x12bf   :  { %904 = dma.vmem_to_hbm [thread:$0]  %s897_s7, 1024, %s899_s10, [#allocation7], %s1231_s11, %s1231_s11, %s1232_s12  }
0x12c0   :  { %1220 = dma.done.wait [#allocation7], 1024  }
0x12c1   :  { %1221 = vsyncadd [#allocation7], 4294966272 }
0x12c2   :  { %909 = vsyncpa [#allocation6], 1 }
0x12c3   :  { %910 = vsyncpa [#allocation9], 1 }
0x12c4   :  { %911 = vsyncpa [#allocation7], 1 }

</bundles_post_ra>
